<compile_context>
chip_gen: v7x
topology: tpu7x:2x2x1
jax: 0.10.0
libtpu: 0.0.40
codegen_flags: <defaults>
</compile_context>

<pallas_src>
import functools

import jax
import jax.numpy as jnp
from jax.experimental import pallas as pl
from jax.experimental.pallas import tpu as pltpu


LN_EPS = 1e-5  # PyTorch LayerNorm default


def _default_vmem_limit():
    """Scoped-VMEM cap per generation: ~96 MB on v5e/v6e (128 MB physical),
    ~48 MB on v7x (64 MB physical).  Falls back to 48 MB if the query fails."""
    try:
        cap = pltpu.get_tpu_info().vmem_capacity_bytes
        return int(max(32 << 20, min(cap - (16 << 20), 96 << 20)))
    except Exception:  # pragma: no cover - conservative fallback
        return 48 << 20


VMEM_LIMIT = _default_vmem_limit()


def _tile(dim, preferred, align=8):
    """Largest divisor of `dim` that is <= `preferred` and a multiple of
    `align` (keeps BlockSpec blocks (8,128)-friendly).  Falls back to the full
    dim, which always satisfies the block-shape rules."""
    if dim <= preferred:
        return dim
    t = preferred - preferred % align
    while t >= align:
        if dim % t == 0:
            return t
        t -= align
    return dim


# ----------------------------------------------------------------------------
# Pallas kernels
# ----------------------------------------------------------------------------

def _matmul_bias_kernel(x_ref, w_ref, b_ref, o_ref):
    # o = x @ w + b; the weight block is constant across the grid (resident).
    o_ref[...] = (jnp.dot(x_ref[...], w_ref[...],
                          preferred_element_type=jnp.float32)
                  + b_ref[...]).astype(o_ref.dtype)


def _flash_attn_kernel(live_ref, q_ref, k_ref, v_ref, mask_ref, o_ref,
                       m_ref, l_ref, acc_ref, *, num_heads):
    # Online-softmax attention over kv tiles; all heads of one batch per step.
    # q_ref: [1, tq, H]; k_ref/v_ref: [1, tkv, H]; mask_ref: [1, 1, tkv] f32.
    # live_ref: SMEM [B, n_kv] int32 (1 if the kv tile has any unmasked key).
    # Attention scale is pre-folded into the Q projection weights.
    b = pl.program_id(0)
    kv = pl.program_id(2)
    H = q_ref.shape[-1]
    dh = H // num_heads

    @pl.when(kv == 0)
    def _():
        m_ref[...] = jnp.full_like(m_ref, -1e30)
        l_ref[...] = jnp.zeros_like(l_ref)
        acc_ref[...] = jnp.zeros_like(acc_ref)

    @pl.when(live_ref[b, kv] > 0)          # skip fully-masked kv tiles
    def _():
        mask = mask_ref[0]                 # [1, tkv] f32 additive key mask
        m_prev = m_ref[...]                # [tq, nh]  (one load per kv step)
        l_prev = l_ref[...]                # [tq, nh]
        m_cols, l_cols = [], []

        for h in range(num_heads):         # unrolled at trace time
            sl = slice(h * dh, (h + 1) * dh)
            qh = q_ref[0, :, sl]           # [tq, dh]  bf16
            kh = k_ref[0, :, sl]           # [tkv, dh] bf16
            vh = v_ref[0, :, sl]           # [tkv, dh] bf16

            # Contract last dims of q and k (no explicit k.T transpose).
            s = jax.lax.dot_general(qh, kh, (((1,), (1,)), ((), ())),
                                    preferred_element_type=jnp.float32)
            s = s + mask                   # scale already folded into W_q/b_q

            m_p = m_prev[:, h:h + 1]       # [tq, 1] (register slice)
            m_n = jnp.maximum(m_p, jnp.max(s, axis=-1, keepdims=True))
            alpha = jnp.exp(m_p - m_n)
            p = jnp.exp(s - m_n)           # [tq, tkv] f32
            l_cols.append(alpha * l_prev[:, h:h + 1]
                          + jnp.sum(p, axis=-1, keepdims=True))
            m_cols.append(m_n)
            pv = jnp.dot(p.astype(vh.dtype), vh,
                         preferred_element_type=jnp.float32)
            # Head-major accumulator: full aligned [tq, dh] block per head.
            acc_ref[h] = alpha * acc_ref[h] + pv

        # Single full-width stores per kv step (no per-head 1-lane RMWs).
        m_ref[...] = jnp.concatenate(m_cols, axis=-1)
        l_ref[...] = jnp.concatenate(l_cols, axis=-1)

    @pl.when(kv == pl.num_programs(2) - 1)
    def _():
        inv = pl.reciprocal(l_ref[...], approx=True)     # [tq, nh], EUP
        ctx = jnp.concatenate(
            [acc_ref[h] * inv[:, h:h + 1] for h in range(num_heads)], axis=-1)
        o_ref[0] = ctx.astype(o_ref.dtype)               # one lane-dense store


def _proj_add_ln_kernel(x_ref, w_ref, b_ref, r_ref, g_ref, bb_ref, o_ref, *,
                        eps):
    # o = LayerNorm(x @ w + b + residual); weight resident, single K step.
    h = (jnp.dot(x_ref[...], w_ref[...], preferred_element_type=jnp.float32)
         + b_ref[...] + r_ref[...].astype(jnp.float32))
    mu = jnp.mean(h, axis=-1, keepdims=True)
    var = jnp.mean(jnp.square(h - mu), axis=-1, keepdims=True)
    n = (h - mu) * jax.lax.rsqrt(var + eps)
    o_ref[...] = (n * g_ref[...] + bb_ref[...]).astype(o_ref.dtype)


def _ffn_add_ln_kernel(x_ref, w1_ref, b1_ref, w2_ref, b2_ref, g_ref, bb_ref,
                       o_ref, *, eps):
    # o = LayerNorm(GELU(x @ w1 + b1) @ w2 + b2 + x); both weights resident.
    x32 = x_ref[...].astype(jnp.float32)
    h = jnp.dot(x_ref[...], w1_ref[...],
                preferred_element_type=jnp.float32) + b1_ref[...]
    h = jax.nn.gelu(h, approximate=True)       # tanh GELU (EUP-friendly)
    z = jnp.dot(h.astype(w2_ref.dtype), w2_ref[...],
                preferred_element_type=jnp.float32) + b2_ref[...] + x32
    mu = jnp.mean(z, axis=-1, keepdims=True)
    var = jnp.mean(jnp.square(z - mu), axis=-1, keepdims=True)
    n = (z - mu) * jax.lax.rsqrt(var + eps)
    o_ref[...] = (n * g_ref[...] + bb_ref[...]).astype(o_ref.dtype)


# ----------------------------------------------------------------------------
# Pallas wrappers
# ----------------------------------------------------------------------------

def matmul_bias(x, w, b, *, tm=512):
    """o = x @ w + b; full [K, N] weight VMEM-resident (constant block index ->
    fetched once), grid only over M."""
    M, K = x.shape
    N = w.shape[1]
    tm = _tile(M, tm)
    return pl.pallas_call(
        _matmul_bias_kernel,
        out_shape=jax.ShapeDtypeStruct((M, N), x.dtype),
        grid_spec=pltpu.PrefetchScalarGridSpec(
            num_scalar_prefetch=0,
            grid=(M // tm,),
            in_specs=[pl.BlockSpec((tm, K), lambda i: (i, 0)),
                      pl.BlockSpec((K, N), lambda i: (0, 0)),    # resident
                      pl.BlockSpec((1, N), lambda i: (0, 0))],
            out_specs=pl.BlockSpec((tm, N), lambda i: (i, 0))),
        compiler_params=pltpu.CompilerParams(
            dimension_semantics=("parallel",),
            vmem_limit_bytes=VMEM_LIMIT),
    )(x, w, b.reshape(1, N).astype(jnp.float32))


def flash_attention(qkv, add_mask, key_live, num_heads, *, tq=256, tkv=256):
    """qkv: [B, S, 3H] fused projection (bf16); add_mask: [B, 1, S] f32
    additive key mask; key_live: [B, S] bool (True where key participates)."""
    B, S, H3 = qkv.shape
    H = H3 // 3
    assert H % num_heads == 0
    tq = _tile(S, tq, align=8)
    tkv = _tile(S, tkv, align=128)     # tkv is the lane dim of the mask block
    n_kv = S // tkv

    # Per-(batch, kv-tile) liveness table -> scalar prefetch (SMEM) used to
    # gate fully-masked kv tiles.
    # TODO(synk): extend to data-dependent kv index_maps (live-tile lists) to
    # also skip the DMAs and realize the O(S*window) Longformer pattern.
    live = jnp.any(key_live.reshape(B, n_kv, tkv), axis=-1).astype(jnp.int32)

    if H % 128 == 0:
        # Read q/k/v straight out of the fused array: same operand three
        # times, column block indices 0/1/2 -> no JAX-side slices/copies.
        q_arr, k_arr, v_arr = qkv, qkv, qkv
        q_off, k_off, v_off = 0, 1, 2
    else:
        # H-wide blocks of a 3H array need lane alignment; fall back to slices.
        q_arr, k_arr, v_arr = qkv[..., :H], qkv[..., H:2 * H], qkv[..., 2 * H:]
        q_off = k_off = v_off = 0

    def q_map(off):
        return lambda b, i, j, live_ref: (b, i, off)

    def kv_map(off):
        return lambda b, i, j, live_ref: (b, j, off)

    kernel = functools.partial(_flash_attn_kernel, num_heads=num_heads)
    return pl.pallas_call(
        kernel,
        out_shape=jax.ShapeDtypeStruct((B, S, H), qkv.dtype),
        grid_spec=pltpu.PrefetchScalarGridSpec(
            num_scalar_prefetch=1,                       # live flags (SMEM)
            grid=(B, S // tq, n_kv),
            in_specs=[pl.BlockSpec((1, tq, H), q_map(q_off)),
                      pl.BlockSpec((1, tkv, H), kv_map(k_off)),
                      pl.BlockSpec((1, tkv, H), kv_map(v_off)),
                      pl.BlockSpec((1, 1, tkv),
                                   lambda b, i, j, live_ref: (b, 0, j))],
            out_specs=pl.BlockSpec((1, tq, H),
                                   lambda b, i, j, live_ref: (b, i, 0)),
            scratch_shapes=[
                pltpu.VMEM((tq, num_heads), jnp.float32),                # m
                pltpu.VMEM((tq, num_heads), jnp.float32),                # l
                pltpu.VMEM((num_heads, tq, H // num_heads), jnp.float32)]),
        compiler_params=pltpu.CompilerParams(
            dimension_semantics=("parallel", "parallel", "arbitrary"),
            vmem_limit_bytes=VMEM_LIMIT),
    )(live, q_arr, k_arr, v_arr, add_mask)


def proj_add_ln(x, w, b, residual, gamma, beta, *, tm=512):
    """LayerNorm(x @ w + b + residual); [K, H] weight resident, grid over M."""
    M, K = x.shape
    H = w.shape[1]
    tm = _tile(M, tm)
    return pl.pallas_call(
        functools.partial(_proj_add_ln_kernel, eps=LN_EPS),
        out_shape=jax.ShapeDtypeStruct((M, H), x.dtype),
        grid_spec=pltpu.PrefetchScalarGridSpec(
            num_scalar_prefetch=0,
            grid=(M // tm,),
            in_specs=[pl.BlockSpec((tm, K), lambda i: (i, 0)),   # ctx
                      pl.BlockSpec((K, H), lambda i: (0, 0)),    # wo (resident)
                      pl.BlockSpec((1, H), lambda i: (0, 0)),    # bo
                      pl.BlockSpec((tm, H), lambda i: (i, 0)),   # residual
                      pl.BlockSpec((1, H), lambda i: (0, 0)),    # gamma
                      pl.BlockSpec((1, H), lambda i: (0, 0))],   # beta
            out_specs=pl.BlockSpec((tm, H), lambda i: (i, 0))),
        compiler_params=pltpu.CompilerParams(
            dimension_semantics=("parallel",),
            vmem_limit_bytes=VMEM_LIMIT),
    )(x, w, b.reshape(1, H).astype(jnp.float32), residual,
      gamma.reshape(1, H), beta.reshape(1, H))


def ffn_add_ln(x, w1, b1, w2, b2, gamma, beta, *, tm=256):
    """LayerNorm(GELU(x @ w1 + b1) @ w2 + b2 + x); w1/w2 resident, grid over M.
    ~18 MB of double-buffered weights at Longformer-base shapes -> fits the
    per-generation VMEM limit (48 MB on v7x, 96 MB on v5e/v6e)."""
    M, H = x.shape
    I = w1.shape[1]
    tm = _tile(M, tm)
    return pl.pallas_call(
        functools.partial(_ffn_add_ln_kernel, eps=LN_EPS),
        out_shape=jax.ShapeDtypeStruct((M, H), x.dtype),
        grid_spec=pltpu.PrefetchScalarGridSpec(
            num_scalar_prefetch=0,
            grid=(M // tm,),
            in_specs=[pl.BlockSpec((tm, H), lambda i: (i, 0)),   # x
                      pl.BlockSpec((H, I), lambda i: (0, 0)),    # w1 (resident)
                      pl.BlockSpec((1, I), lambda i: (0, 0)),    # b1
                      pl.BlockSpec((I, H), lambda i: (0, 0)),    # w2 (resident)
                      pl.BlockSpec((1, H), lambda i: (0, 0)),    # b2
                      pl.BlockSpec((1, H), lambda i: (0, 0)),    # gamma
                      pl.BlockSpec((1, H), lambda i: (0, 0))],   # beta
            out_specs=pl.BlockSpec((tm, H), lambda i: (i, 0))),
        compiler_params=pltpu.CompilerParams(
            dimension_semantics=("parallel",),
            vmem_limit_bytes=VMEM_LIMIT),
    )(x, w1, b1.reshape(1, I).astype(jnp.float32), w2,
      b2.reshape(1, H).astype(jnp.float32),
      gamma.reshape(1, H), beta.reshape(1, H))


# ----------------------------------------------------------------------------
# Model (glue in plain JAX, compute in Pallas)
# ----------------------------------------------------------------------------

def longformer_layer(x, p, add_mask, key_live, num_heads):
    B, S, H = x.shape
    x2 = x.reshape(B * S, H)

    # Fused QKV projection (one matmul, weight fetched once).
    qkv = matmul_bias(x2, p["wqkv"], p["bqkv"]).reshape(B, S, 3 * H)

    # Flash attention reads q/k/v directly from the fused array.
    ctx = flash_attention(qkv, add_mask, key_live, num_heads)

    # Output projection + residual + LayerNorm fused.
    h = proj_add_ln(ctx.reshape(B * S, H), p["wo"], p["bo"], x2,
                    p["ln1_g"], p["ln1_b"])

    # FFN + residual + LayerNorm fused.
    out = ffn_add_ln(h, p["w1"], p["b1"], p["w2"], p["b2"],
                     p["ln2_g"], p["ln2_b"])
    return out.reshape(B, S, H)


def custom_longformer_forward(params, input_ids, attention_mask=None,
                              global_attention_mask=None, *, num_heads):
    B, S = input_ids.shape
    # Embedding lookups (gather) — plain-JAX glue.
    input_emb = jnp.take(params["embedding"], input_ids, axis=0)
    pos_ids = jnp.arange(S, dtype=jnp.int32)
    pos_emb = jnp.take(params["position_embedding"], pos_ids, axis=0)[None, :, :]
    x = (input_emb + pos_emb).astype(jnp.bfloat16)
    # dropout: identity (inference)

    if attention_mask is None:
        attention_mask = jnp.ones((B, S), dtype=jnp.float32)
    if global_attention_mask is None:
        global_attention_mask = jnp.zeros((B, S), dtype=jnp.float32)
    combined = jnp.maximum(attention_mask.astype(jnp.float32),
                           global_attention_mask.astype(jnp.float32))
    key_live = combined > 0                                  # [B, S] bool
    # Additive key mask, kept in f32 (mask/softmax math never in bf16).
    add_mask = jnp.where(key_live, 0.0, -1e9).astype(jnp.float32)[:, None, :]

    for layer_params in params["layers"]:
        x = longformer_layer(x, layer_params, add_mask, key_live, num_heads)
    return x.astype(jnp.float32)


# ----------------------------------------------------------------------------
# Deterministic parameter init (weights bf16 for the MXU, biases/LN in f32).
# The attention scale 1/sqrt(dh) is folded into the Q projection here, so the
# flash kernel never multiplies scores by it (do the same when importing
# PyTorch weights).
# ----------------------------------------------------------------------------

def make_params(key, vocab_size, max_position_embeddings, hidden_size,
                num_layers, num_heads, intermediate_size):
    keys = jax.random.split(key, 2 + num_layers)
    std = 0.02
    H, I = hidden_size, intermediate_size
    dh = H // num_heads
    scale = 1.0 / (dh ** 0.5)
    params = {
        "embedding": std * jax.random.normal(
            keys[0], (vocab_size, H), jnp.float32),
        "position_embedding": std * jax.random.normal(
            keys[1], (max_position_embeddings, H), jnp.float32),
        "layers": [],
    }
    for l in range(num_layers):
        lk = jax.random.split(keys[2 + l], 4)
        wqkv = std * jax.random.normal(lk[0], (H, 3 * H), jnp.float32)
        wqkv = wqkv.at[:, :H].multiply(scale)        # fold attention scale (Q)
        bqkv = jnp.zeros((3 * H,), jnp.float32)
        bqkv = bqkv.at[:H].multiply(scale)           # (no-op for zero bias)
        params["layers"].append({
            "wqkv": wqkv.astype(jnp.bfloat16),
            "bqkv": bqkv,
            "wo": (std * jax.random.normal(lk[1], (H, H), jnp.float32)
                   ).astype(jnp.bfloat16),
            "bo": jnp.zeros((H,), jnp.float32),
            "ln1_g": jnp.ones((H,), jnp.float32),
            "ln1_b": jnp.zeros((H,), jnp.float32),
            "w1": (std * jax.random.normal(lk[2], (H, I), jnp.float32)
                   ).astype(jnp.bfloat16),
            "b1": jnp.zeros((I,), jnp.float32),
            "w2": (std * jax.random.normal(lk[3], (I, H), jnp.float32)
                   ).astype(jnp.bfloat16),
            "b2": jnp.zeros((H,), jnp.float32),
            "ln2_g": jnp.ones((H,), jnp.float32),
            "ln2_b": jnp.zeros((H,), jnp.float32),
        })
    return params


# ----------------------------------------------------------------------------
# Main
# ----------------------------------------------------------------------------

if __name__ == "__main__":
    vocab_size = 100
    max_position_embeddings = 64
    hidden_size = 128            # multiple of 128 -> fused-QKV BlockSpec path
    num_layers = 2
    num_heads = 4                # dh = 32
    intermediate_size = 256
    batch, seq = 2, 8

    key = jax.random.PRNGKey(0)
    pkey, ikey = jax.random.split(key)

    params = make_params(pkey, vocab_size, max_position_embeddings,
                         hidden_size, num_layers, num_heads, intermediate_size)

    input_ids = jax.random.randint(ikey, (batch, seq), 0, vocab_size,
                                   dtype=jnp.int32)
    attention_mask = jnp.ones((batch, seq), dtype=jnp.float32)
    attention_mask = attention_mask.at[1, -2:].set(0.0)           # pad last 2
    global_attention_mask = jnp.zeros((batch, seq), dtype=jnp.float32)
    global_attention_mask = global_attention_mask.at[:, 0].set(1.0)  # CLS

    fwd = jax.jit(functools.partial(custom_longformer_forward,
                                    num_heads=num_heads))
    out = fwd(params, input_ids, attention_mask, global_attention_mask)
    out = jax.block_until_ready(out)

    assert out.shape == (batch, seq, hidden_size)
    assert jnp.all(jnp.isfinite(out))
    print("KERNEL_OK")
</pallas_src>

<mosaic_0001>
module attributes {stable_mosaic.version = 11 : i64} {
  func.func @_matmul_bias_kernel(%arg0: i32, %arg1: memref<16x128xbf16, #tpu.memory_space<vmem>>, %arg2: memref<128x384xbf16, #tpu.memory_space<vmem>>, %arg3: memref<1x384xf32, #tpu.memory_space<vmem>>, %arg4: memref<16x384xbf16, #tpu.memory_space<vmem>>) attributes {dimension_semantics = [#tpu.dimension_semantics<parallel>], iteration_bounds = array<i64: 1>, scalar_prefetch = 0 : i64, scratch_operands = 0 : i64, tpu.core_type = #tpu.core_type<tc>, window_params = [{transform_indices = @transform_0, window_bounds = array<i64: 16, 128>}, {pipeline_mode = #tpu.pipeline_mode<synchronous>, transform_indices = @transform_1, window_bounds = array<i64: 128, 384>}, {pipeline_mode = #tpu.pipeline_mode<synchronous>, transform_indices = @transform_2, window_bounds = array<i64: 1, 384>}, {transform_indices = @transform_3, window_bounds = array<i64: 16, 384>}]} {
    %c0 = arith.constant 0 : index
    %c0_0 = arith.constant 0 : index
    %0 = vector.load %arg1[%c0, %c0_0] : memref<16x128xbf16, #tpu.memory_space<vmem>>, vector<16x128xbf16>
    %c0_1 = arith.constant 0 : index
    %c0_2 = arith.constant 0 : index
    %1 = vector.load %arg2[%c0_1, %c0_2] : memref<128x384xbf16, #tpu.memory_space<vmem>>, vector<128x384xbf16>
    %cst = arith.constant dense<0.000000e+00> : vector<16x384xf32>
    %2 = tpu.matmul %0, %1, %cst {dimension_numbers = #tpu.dot_dimension_numbers<[1], [0], [0], [1], [0, 0, 1, 1], [], []>} : vector<16x128xbf16>, vector<128x384xbf16>, vector<16x384xf32> -> vector<16x384xf32>
    %c0_3 = arith.constant 0 : index
    %c0_4 = arith.constant 0 : index
    %3 = vector.load %arg3[%c0_3, %c0_4] : memref<1x384xf32, #tpu.memory_space<vmem>>, vector<1x384xf32>
    %4 = vector.broadcast %3 : vector<1x384xf32> to vector<16x384xf32>
    %5 = arith.addf %2, %4 : vector<16x384xf32>
    %6 = arith.truncf %5 : vector<16x384xf32> to vector<16x384xbf16>
    %c0_5 = arith.constant 0 : index
    %c0_6 = arith.constant 0 : index
    %7 = vector.load %arg4[%c0_5, %c0_6] : memref<16x384xbf16, #tpu.memory_space<vmem>>, vector<16x384xbf16>
    tpu.vector_store %arg4[%c0_5, %c0_6], %6 {strides = array<i32>} : memref<16x384xbf16, #tpu.memory_space<vmem>>, vector<16x384xbf16>,
    return
  }
  func.func @transform_0(%arg0: i32) -> (i32, i32) {
    %c0_i32 = arith.constant 0 : i32
    %c0_i32_0 = arith.constant 0 : i32
    return %arg0, %c0_i32 : i32, i32
  }
  func.func @transform_1(%arg0: i32) -> (i32, i32) {
    %c0_i32 = arith.constant 0 : i32
    %c0_i32_0 = arith.constant 0 : i32
    %c0_i32_1 = arith.constant 0 : i32
    return %c0_i32, %c0_i32_0 : i32, i32
  }
  func.func @transform_2(%arg0: i32) -> (i32, i32) {
    %c0_i32 = arith.constant 0 : i32
    %c0_i32_0 = arith.constant 0 : i32
    %c0_i32_1 = arith.constant 0 : i32
    return %c0_i32, %c0_i32_0 : i32, i32
  }
  func.func @transform_3(%arg0: i32) -> (i32, i32) {
    %c0_i32 = arith.constant 0 : i32
    %c0_i32_0 = arith.constant 0 : i32
    return %arg0, %c0_i32 : i32, i32
  }
}

module attributes {stable_mosaic.version = 11 : i64} {
  func.func @_proj_add_ln_kernel(%arg0: i32, %arg1: memref<16x128xbf16, #tpu.memory_space<vmem>>, %arg2: memref<128x128xbf16, #tpu.memory_space<vmem>>, %arg3: memref<1x128xf32, #tpu.memory_space<vmem>>, %arg4: memref<16x128xbf16, #tpu.memory_space<vmem>>, %arg5: memref<1x128xf32, #tpu.memory_space<vmem>>, %arg6: memref<1x128xf32, #tpu.memory_space<vmem>>, %arg7: memref<16x128xbf16, #tpu.memory_space<vmem>>) attributes {dimension_semantics = [#tpu.dimension_semantics<parallel>], iteration_bounds = array<i64: 1>, scalar_prefetch = 0 : i64, scratch_operands = 0 : i64, tpu.core_type = #tpu.core_type<tc>, window_params = [{transform_indices = @transform_0, window_bounds = array<i64: 16, 128>}, {pipeline_mode = #tpu.pipeline_mode<synchronous>, transform_indices = @transform_1, window_bounds = array<i64: 128, 128>}, {pipeline_mode = #tpu.pipeline_mode<synchronous>, transform_indices = @transform_2, window_bounds = array<i64: 1, 128>}, {transform_indices = @transform_3, window_bounds = array<i64: 16, 128>}, {pipeline_mode = #tpu.pipeline_mode<synchronous>, transform_indices = @transform_4, window_bounds = array<i64: 1, 128>}, {pipeline_mode = #tpu.pipeline_mode<synchronous>, transform_indices = @transform_5, window_bounds = array<i64: 1, 128>}, {transform_indices = @transform_6, window_bounds = array<i64: 16, 128>}]} {
    %c0 = arith.constant 0 : index
    %c0_0 = arith.constant 0 : index
    %0 = vector.load %arg1[%c0, %c0_0] : memref<16x128xbf16, #tpu.memory_space<vmem>>, vector<16x128xbf16>
    %c0_1 = arith.constant 0 : index
    %c0_2 = arith.constant 0 : index
    %1 = vector.load %arg2[%c0_1, %c0_2] : memref<128x128xbf16, #tpu.memory_space<vmem>>, vector<128x128xbf16>
    %cst = arith.constant dense<0.000000e+00> : vector<16x128xf32>
    %2 = tpu.matmul %0, %1, %cst {dimension_numbers = #tpu.dot_dimension_numbers<[1], [0], [0], [1], [0, 0, 1, 1], [], []>} : vector<16x128xbf16>, vector<128x128xbf16>, vector<16x128xf32> -> vector<16x128xf32>
    %c0_3 = arith.constant 0 : index
    %c0_4 = arith.constant 0 : index
    %3 = vector.load %arg3[%c0_3, %c0_4] : memref<1x128xf32, #tpu.memory_space<vmem>>, vector<1x128xf32>
    %4 = vector.broadcast %3 : vector<1x128xf32> to vector<16x128xf32>
    %5 = arith.addf %2, %4 : vector<16x128xf32>
    %c0_5 = arith.constant 0 : index
    %c0_6 = arith.constant 0 : index
    %6 = vector.load %arg4[%c0_5, %c0_6] : memref<16x128xbf16, #tpu.memory_space<vmem>>, vector<16x128xbf16>
    %7 = arith.extf %6 : vector<16x128xbf16> to vector<16x128xf32>
    %8 = arith.addf %5, %7 : vector<16x128xf32>
    %cst_7 = arith.constant dense<0.000000e+00> : vector<16xf32>
    %9 = vector.multi_reduction <add>, %8, %cst_7 [1] : vector<16x128xf32> to vector<16xf32>
    %10 = vector.shape_cast %9 : vector<16xf32> to vector<16x1xf32>
    %cst_8 = arith.constant 1.280000e+02 : f32
    %11 = vector.broadcast %cst_8 : f32 to vector<16x1xf32>
    %12 = arith.divf %10, %11 : vector<16x1xf32>
    %13 = vector.broadcast %12 : vector<16x1xf32> to vector<16x128xf32>
    %14 = arith.subf %8, %13 : vector<16x128xf32>
    %15 = arith.mulf %14, %14 : vector<16x128xf32>
    %cst_9 = arith.constant dense<0.000000e+00> : vector<16xf32>
    %16 = vector.multi_reduction <add>, %15, %cst_9 [1] : vector<16x128xf32> to vector<16xf32>
    %17 = vector.shape_cast %16 : vector<16xf32> to vector<16x1xf32>
    %cst_10 = arith.constant 1.280000e+02 : f32
    %18 = vector.broadcast %cst_10 : f32 to vector<16x1xf32>
    %19 = arith.divf %17, %18 : vector<16x1xf32>
    %20 = vector.broadcast %12 : vector<16x1xf32> to vector<16x128xf32>
    %21 = arith.subf %8, %20 : vector<16x128xf32>
    %cst_11 = arith.constant 9.99999974E-6 : f32
    %22 = vector.broadcast %cst_11 : f32 to vector<16x1xf32>
    %23 = arith.addf %19, %22 : vector<16x1xf32>
    %24 = math.rsqrt %23 : vector<16x1xf32>
    %25 = vector.broadcast %24 : vector<16x1xf32> to vector<16x128xf32>
    %26 = arith.mulf %21, %25 : vector<16x128xf32>
    %c0_12 = arith.constant 0 : index
    %c0_13 = arith.constant 0 : index
    %27 = vector.load %arg5[%c0_12, %c0_13] : memref<1x128xf32, #tpu.memory_space<vmem>>, vector<1x128xf32>
    %28 = vector.broadcast %27 : vector<1x128xf32> to vector<16x128xf32>
    %29 = arith.mulf %26, %28 : vector<16x128xf32>
    %c0_14 = arith.constant 0 : index
    %c0_15 = arith.constant 0 : index
    %30 = vector.load %arg6[%c0_14, %c0_15] : memref<1x128xf32, #tpu.memory_space<vmem>>, vector<1x128xf32>
    %31 = vector.broadcast %30 : vector<1x128xf32> to vector<16x128xf32>
    %32 = arith.addf %29, %31 : vector<16x128xf32>
    %33 = arith.truncf %32 : vector<16x128xf32> to vector<16x128xbf16>
    %c0_16 = arith.constant 0 : index
    %c0_17 = arith.constant 0 : index
    %34 = vector.load %arg7[%c0_16, %c0_17] : memref<16x128xbf16, #tpu.memory_space<vmem>>, vector<16x128xbf16>
    tpu.vector_store %arg7[%c0_16, %c0_17], %33 {strides = array<i32>} : memref<16x128xbf16, #tpu.memory_space<vmem>>, vector<16x128xbf16>,
    return
  }
  func.func @transform_0(%arg0: i32) -> (i32, i32) {
    %c0_i32 = arith.constant 0 : i32
    %c0_i32_0 = arith.constant 0 : i32
    return %arg0, %c0_i32 : i32, i32
  }
  func.func @transform_1(%arg0: i32) -> (i32, i32) {
    %c0_i32 = arith.constant 0 : i32
    %c0_i32_0 = arith.constant 0 : i32
    %c0_i32_1 = arith.constant 0 : i32
    return %c0_i32, %c0_i32_0 : i32, i32
  }
  func.func @transform_2(%arg0: i32) -> (i32, i32) {
    %c0_i32 = arith.constant 0 : i32
    %c0_i32_0 = arith.constant 0 : i32
    %c0_i32_1 = arith.constant 0 : i32
    return %c0_i32, %c0_i32_0 : i32, i32
  }
  func.func @transform_3(%arg0: i32) -> (i32, i32) {
    %c0_i32 = arith.constant 0 : i32
    %c0_i32_0 = arith.constant 0 : i32
    return %arg0, %c0_i32 : i32, i32
  }
  func.func @transform_4(%arg0: i32) -> (i32, i32) {
    %c0_i32 = arith.constant 0 : i32
    %c0_i32_0 = arith.constant 0 : i32
    %c0_i32_1 = arith.constant 0 : i32
    return %c0_i32, %c0_i32_0 : i32, i32
  }
  func.func @transform_5(%arg0: i32) -> (i32, i32) {
    %c0_i32 = arith.constant 0 : i32
    %c0_i32_0 = arith.constant 0 : i32
    %c0_i32_1 = arith.constant 0 : i32
    return %c0_i32, %c0_i32_0 : i32, i32
  }
  func.func @transform_6(%arg0: i32) -> (i32, i32) {
    %c0_i32 = arith.constant 0 : i32
    %c0_i32_0 = arith.constant 0 : i32
    return %arg0, %c0_i32 : i32, i32
  }
}

module attributes {stable_mosaic.version = 11 : i64} {
  func.func @_ffn_add_ln_kernel(%arg0: i32, %arg1: memref<16x128xbf16, #tpu.memory_space<vmem>>, %arg2: memref<128x256xbf16, #tpu.memory_space<vmem>>, %arg3: memref<1x256xf32, #tpu.memory_space<vmem>>, %arg4: memref<256x128xbf16, #tpu.memory_space<vmem>>, %arg5: memref<1x128xf32, #tpu.memory_space<vmem>>, %arg6: memref<1x128xf32, #tpu.memory_space<vmem>>, %arg7: memref<1x128xf32, #tpu.memory_space<vmem>>, %arg8: memref<16x128xbf16, #tpu.memory_space<vmem>>) attributes {dimension_semantics = [#tpu.dimension_semantics<parallel>], iteration_bounds = array<i64: 1>, scalar_prefetch = 0 : i64, scratch_operands = 0 : i64, tpu.core_type = #tpu.core_type<tc>, window_params = [{transform_indices = @transform_0, window_bounds = array<i64: 16, 128>}, {pipeline_mode = #tpu.pipeline_mode<synchronous>, transform_indices = @transform_1, window_bounds = array<i64: 128, 256>}, {pipeline_mode = #tpu.pipeline_mode<synchronous>, transform_indices = @transform_2, window_bounds = array<i64: 1, 256>}, {pipeline_mode = #tpu.pipeline_mode<synchronous>, transform_indices = @transform_3, window_bounds = array<i64: 256, 128>}, {pipeline_mode = #tpu.pipeline_mode<synchronous>, transform_indices = @transform_4, window_bounds = array<i64: 1, 128>}, {pipeline_mode = #tpu.pipeline_mode<synchronous>, transform_indices = @transform_5, window_bounds = array<i64: 1, 128>}, {pipeline_mode = #tpu.pipeline_mode<synchronous>, transform_indices = @transform_6, window_bounds = array<i64: 1, 128>}, {transform_indices = @transform_7, window_bounds = array<i64: 16, 128>}]} {
    %c0 = arith.constant 0 : index
    %c0_0 = arith.constant 0 : index
    %0 = vector.load %arg1[%c0, %c0_0] : memref<16x128xbf16, #tpu.memory_space<vmem>>, vector<16x128xbf16>
    %1 = arith.extf %0 : vector<16x128xbf16> to vector<16x128xf32>
    %c0_1 = arith.constant 0 : index
    %c0_2 = arith.constant 0 : index
    %2 = vector.load %arg1[%c0_1, %c0_2] : memref<16x128xbf16, #tpu.memory_space<vmem>>, vector<16x128xbf16>
    %c0_3 = arith.constant 0 : index
    %c0_4 = arith.constant 0 : index
    %3 = vector.load %arg2[%c0_3, %c0_4] : memref<128x256xbf16, #tpu.memory_space<vmem>>, vector<128x256xbf16>
    %cst = arith.constant dense<0.000000e+00> : vector<16x256xf32>
    %4 = tpu.matmul %2, %3, %cst {dimension_numbers = #tpu.dot_dimension_numbers<[1], [0], [0], [1], [0, 0, 1, 1], [], []>} : vector<16x128xbf16>, vector<128x256xbf16>, vector<16x256xf32> -> vector<16x256xf32>
    %c0_5 = arith.constant 0 : index
    %c0_6 = arith.constant 0 : index
    %5 = vector.load %arg3[%c0_5, %c0_6] : memref<1x256xf32, #tpu.memory_space<vmem>>, vector<1x256xf32>
    %6 = vector.broadcast %5 : vector<1x256xf32> to vector<16x256xf32>
    %7 = arith.addf %4, %6 : vector<16x256xf32>
    %8 = arith.mulf %7, %7 : vector<16x256xf32>
    %9 = arith.mulf %7, %8 : vector<16x256xf32>
    %cst_7 = arith.constant 4.471500e-02 : f32
    %10 = vector.broadcast %cst_7 : f32 to vector<16x256xf32>
    %11 = arith.mulf %10, %9 : vector<16x256xf32>
    %12 = arith.addf %7, %11 : vector<16x256xf32>
    %cst_8 = arith.constant 0.797884583 : f32
    %13 = vector.broadcast %cst_8 : f32 to vector<16x256xf32>
    %14 = arith.mulf %13, %12 : vector<16x256xf32>
    %15 = math.tanh %14 : vector<16x256xf32>
    %cst_9 = arith.constant 1.000000e+00 : f32
    %16 = vector.broadcast %cst_9 : f32 to vector<16x256xf32>
    %17 = arith.addf %16, %15 : vector<16x256xf32>
    %cst_10 = arith.constant 5.000000e-01 : f32
    %18 = vector.broadcast %cst_10 : f32 to vector<16x256xf32>
    %19 = arith.mulf %18, %17 : vector<16x256xf32>
    %20 = arith.mulf %7, %19 : vector<16x256xf32>
    %21 = arith.truncf %20 : vector<16x256xf32> to vector<16x256xbf16>
    %c0_11 = arith.constant 0 : index
    %c0_12 = arith.constant 0 : index
    %22 = vector.load %arg4[%c0_11, %c0_12] : memref<256x128xbf16, #tpu.memory_space<vmem>>, vector<256x128xbf16>
    %cst_13 = arith.constant dense<0.000000e+00> : vector<16x128xf32>
    %23 = tpu.matmul %21, %22, %cst_13 {dimension_numbers = #tpu.dot_dimension_numbers<[1], [0], [0], [1], [0, 0, 1, 1], [], []>} : vector<16x256xbf16>, vector<256x128xbf16>, vector<16x128xf32> -> vector<16x128xf32>
    %c0_14 = arith.constant 0 : index
    %c0_15 = arith.constant 0 : index
    %24 = vector.load %arg5[%c0_14, %c0_15] : memref<1x128xf32, #tpu.memory_space<vmem>>, vector<1x128xf32>
    %25 = vector.broadcast %24 : vector<1x128xf32> to vector<16x128xf32>
    %26 = arith.addf %23, %25 : vector<16x128xf32>
    %27 = arith.addf %26, %1 : vector<16x128xf32>
    %cst_16 = arith.constant dense<0.000000e+00> : vector<16xf32>
    %28 = vector.multi_reduction <add>, %27, %cst_16 [1] : vector<16x128xf32> to vector<16xf32>
    %29 = vector.shape_cast %28 : vector<16xf32> to vector<16x1xf32>
    %cst_17 = arith.constant 1.280000e+02 : f32
    %30 = vector.broadcast %cst_17 : f32 to vector<16x1xf32>
    %31 = arith.divf %29, %30 : vector<16x1xf32>
    %32 = vector.broadcast %31 : vector<16x1xf32> to vector<16x128xf32>
    %33 = arith.subf %27, %32 : vector<16x128xf32>
    %34 = arith.mulf %33, %33 : vector<16x128xf32>
    %cst_18 = arith.constant dense<0.000000e+00> : vector<16xf32>
    %35 = vector.multi_reduction <add>, %34, %cst_18 [1] : vector<16x128xf32> to vector<16xf32>
    %36 = vector.shape_cast %35 : vector<16xf32> to vector<16x1xf32>
    %cst_19 = arith.constant 1.280000e+02 : f32
    %37 = vector.broadcast %cst_19 : f32 to vector<16x1xf32>
    %38 = arith.divf %36, %37 : vector<16x1xf32>
    %39 = vector.broadcast %31 : vector<16x1xf32> to vector<16x128xf32>
    %40 = arith.subf %27, %39 : vector<16x128xf32>
    %cst_20 = arith.constant 9.99999974E-6 : f32
    %41 = vector.broadcast %cst_20 : f32 to vector<16x1xf32>
    %42 = arith.addf %38, %41 : vector<16x1xf32>
    %43 = math.rsqrt %42 : vector<16x1xf32>
    %44 = vector.broadcast %43 : vector<16x1xf32> to vector<16x128xf32>
    %45 = arith.mulf %40, %44 : vector<16x128xf32>
    %c0_21 = arith.constant 0 : index
    %c0_22 = arith.constant 0 : index
    %46 = vector.load %arg6[%c0_21, %c0_22] : memref<1x128xf32, #tpu.memory_space<vmem>>, vector<1x128xf32>
    %47 = vector.broadcast %46 : vector<1x128xf32> to vector<16x128xf32>
    %48 = arith.mulf %45, %47 : vector<16x128xf32>
    %c0_23 = arith.constant 0 : index
    %c0_24 = arith.constant 0 : index
    %49 = vector.load %arg7[%c0_23, %c0_24] : memref<1x128xf32, #tpu.memory_space<vmem>>, vector<1x128xf32>
    %50 = vector.broadcast %49 : vector<1x128xf32> to vector<16x128xf32>
    %51 = arith.addf %48, %50 : vector<16x128xf32>
    %52 = arith.truncf %51 : vector<16x128xf32> to vector<16x128xbf16>
    %c0_25 = arith.constant 0 : index
    %c0_26 = arith.constant 0 : index
    %53 = vector.load %arg8[%c0_25, %c0_26] : memref<16x128xbf16, #tpu.memory_space<vmem>>, vector<16x128xbf16>
    tpu.vector_store %arg8[%c0_25, %c0_26], %52 {strides = array<i32>} : memref<16x128xbf16, #tpu.memory_space<vmem>>, vector<16x128xbf16>,
    return
  }
  func.func @transform_0(%arg0: i32) -> (i32, i32) {
    %c0_i32 = arith.constant 0 : i32
    %c0_i32_0 = arith.constant 0 : i32
    return %arg0, %c0_i32 : i32, i32
  }
  func.func @transform_1(%arg0: i32) -> (i32, i32) {
    %c0_i32 = arith.constant 0 : i32
    %c0_i32_0 = arith.constant 0 : i32
    %c0_i32_1 = arith.constant 0 : i32
    return %c0_i32, %c0_i32_0 : i32, i32
  }
  func.func @transform_2(%arg0: i32) -> (i32, i32) {
    %c0_i32 = arith.constant 0 : i32
    %c0_i32_0 = arith.constant 0 : i32
    %c0_i32_1 = arith.constant 0 : i32
    return %c0_i32, %c0_i32_0 : i32, i32
  }
  func.func @transform_3(%arg0: i32) -> (i32, i32) {
    %c0_i32 = arith.constant 0 : i32
    %c0_i32_0 = arith.constant 0 : i32
    %c0_i32_1 = arith.constant 0 : i32
    return %c0_i32, %c0_i32_0 : i32, i32
  }
  func.func @transform_4(%arg0: i32) -> (i32, i32) {
    %c0_i32 = arith.constant 0 : i32
    %c0_i32_0 = arith.constant 0 : i32
    %c0_i32_1 = arith.constant 0 : i32
    return %c0_i32, %c0_i32_0 : i32, i32
  }
  func.func @transform_5(%arg0: i32) -> (i32, i32) {
    %c0_i32 = arith.constant 0 : i32
    %c0_i32_0 = arith.constant 0 : i32
    %c0_i32_1 = arith.constant 0 : i32
    return %c0_i32, %c0_i32_0 : i32, i32
  }
  func.func @transform_6(%arg0: i32) -> (i32, i32) {
    %c0_i32 = arith.constant 0 : i32
    %c0_i32_0 = arith.constant 0 : i32
    %c0_i32_1 = arith.constant 0 : i32
    return %c0_i32, %c0_i32_0 : i32, i32
  }
  func.func @transform_7(%arg0: i32) -> (i32, i32) {
    %c0_i32 = arith.constant 0 : i32
    %c0_i32_0 = arith.constant 0 : i32
    return %arg0, %c0_i32 : i32, i32
  }
}

module attributes {stable_mosaic.version = 11 : i64} {
  func.func @_flash_attn_kernel(%arg0: i32, %arg1: i32, %arg2: i32, %arg3: memref<2x1xi32, #tpu.memory_space<smem>>, %arg4: memref<1x8x128xbf16, #tpu.memory_space<vmem>>, %arg5: memref<1x8x128xbf16, #tpu.memory_space<vmem>>, %arg6: memref<1x8x128xbf16, #tpu.memory_space<vmem>>, %arg7: memref<1x1x8xf32, #tpu.memory_space<vmem>>, %arg8: memref<1x8x128xbf16, #tpu.memory_space<vmem>>, %arg9: memref<8x4xf32, #tpu.memory_space<vmem>>, %arg10: memref<8x4xf32, #tpu.memory_space<vmem>>, %arg11: memref<4x8x32xf32, #tpu.memory_space<vmem>>) attributes {dimension_semantics = [#tpu.dimension_semantics<parallel>, #tpu.dimension_semantics<parallel>, #tpu.dimension_semantics<arbitrary>], iteration_bounds = array<i64: 2, 1, 1>, scalar_prefetch = 1 : i64, scratch_operands = 3 : i64, tpu.core_type = #tpu.core_type<tc>, window_params = [{transform_indices = @transform_0, window_bounds = array<i64: 1, 8, 128>}, {transform_indices = @transform_1, window_bounds = array<i64: 1, 8, 128>}, {transform_indices = @transform_2, window_bounds = array<i64: 1, 8, 128>}, {transform_indices = @transform_3, window_bounds = array<i64: 1, 1, 8>}, {transform_indices = @transform_4, window_bounds = array<i64: 1, 8, 128>}]} {
    %c0_i32 = arith.constant 0 : i32
    %0 = arith.cmpi eq, %arg2, %c0_i32 : i32
    %1 = arith.extui %0 : i1 to i32
    %c0_i32_0 = arith.constant 0 : i32
    %2 = arith.cmpi ne, %1, %c0_i32_0 : i32
    scf.if %2 {
      %cst = arith.constant -1.000000e+30 : f32
      %12 = vector.broadcast %cst : f32 to vector<8x4xf32>
      %c0 = arith.constant 0 : index
      %c0_5 = arith.constant 0 : index
      %13 = vector.load %arg9[%c0, %c0_5] : memref<8x4xf32, #tpu.memory_space<vmem>>, vector<8x4xf32>
      tpu.vector_store %arg9[%c0, %c0_5], %12 {strides = array<i32>} : memref<8x4xf32, #tpu.memory_space<vmem>>, vector<8x4xf32>,
      %cst_6 = arith.constant 0.000000e+00 : f32
      %14 = vector.broadcast %cst_6 : f32 to vector<8x4xf32>
      %c0_7 = arith.constant 0 : index
      %c0_8 = arith.constant 0 : index
      %15 = vector.load %arg10[%c0_7, %c0_8] : memref<8x4xf32, #tpu.memory_space<vmem>>, vector<8x4xf32>
      tpu.vector_store %arg10[%c0_7, %c0_8], %14 {strides = array<i32>} : memref<8x4xf32, #tpu.memory_space<vmem>>, vector<8x4xf32>,
      %cst_9 = arith.constant 0.000000e+00 : f32
      %16 = vector.broadcast %cst_9 : f32 to vector<4x8x32xf32>
      %c0_10 = arith.constant 0 : index
      %c0_11 = arith.constant 0 : index
      %c0_12 = arith.constant 0 : index
      %17 = vector.load %arg11[%c0_10, %c0_11, %c0_12] : memref<4x8x32xf32, #tpu.memory_space<vmem>>, vector<4x8x32xf32>
      tpu.vector_store %arg11[%c0_10, %c0_11, %c0_12], %16 {strides = array<i32>} : memref<4x8x32xf32, #tpu.memory_space<vmem>>, vector<4x8x32xf32>,
    } else {
    }
    %3 = arith.index_cast %arg0 : i32 to index
    %4 = arith.index_cast %arg2 : i32 to index
    %5 = memref.load %arg3[%3, %4] : memref<2x1xi32, #tpu.memory_space<smem>>
    %c0_i32_1 = arith.constant 0 : i32
    %6 = arith.cmpi sgt, %5, %c0_i32_1 : i32
    %7 = arith.extui %6 : i1 to i32
    %c0_i32_2 = arith.constant 0 : i32
    %8 = arith.cmpi ne, %7, %c0_i32_2 : i32
    scf.if %8 {
      %c0 = arith.constant 0 : index
      %c0_5 = arith.constant 0 : index
      %c0_6 = arith.constant 0 : index
      %12 = vector.load %arg7[%c0, %c0_5, %c0_6] : memref<1x1x8xf32, #tpu.memory_space<vmem>>, vector<1x1x8xf32>
      %13 = vector.shape_cast %12 : vector<1x1x8xf32> to vector<1x8xf32>
      %c0_7 = arith.constant 0 : index
      %c0_8 = arith.constant 0 : index
      %14 = vector.load %arg9[%c0_7, %c0_8] : memref<8x4xf32, #tpu.memory_space<vmem>>, vector<8x4xf32>
      %c0_9 = arith.constant 0 : index
      %c0_10 = arith.constant 0 : index
      %15 = vector.load %arg10[%c0_9, %c0_10] : memref<8x4xf32, #tpu.memory_space<vmem>>, vector<8x4xf32>
      %c0_11 = arith.constant 0 : index
      %c0_12 = arith.constant 0 : index
      %c0_13 = arith.constant 0 : index
      %16 = vector.load %arg4[%c0_11, %c0_12, %c0_13] : memref<1x8x128xbf16, #tpu.memory_space<vmem>>, vector<1x8x32xbf16>
      %17 = vector.shape_cast %16 : vector<1x8x32xbf16> to vector<8x32xbf16>
      %c0_14 = arith.constant 0 : index
      %c0_15 = arith.constant 0 : index
      %c0_16 = arith.constant 0 : index
      %18 = vector.load %arg5[%c0_14, %c0_15, %c0_16] : memref<1x8x128xbf16, #tpu.memory_space<vmem>>, vector<1x8x32xbf16>
      %19 = vector.shape_cast %18 : vector<1x8x32xbf16> to vector<8x32xbf16>
      %c0_17 = arith.constant 0 : index
      %c0_18 = arith.constant 0 : index
      %c0_19 = arith.constant 0 : index
      %20 = vector.load %arg6[%c0_17, %c0_18, %c0_19] : memref<1x8x128xbf16, #tpu.memory_space<vmem>>, vector<1x8x32xbf16>
      %21 = vector.shape_cast %20 : vector<1x8x32xbf16> to vector<8x32xbf16>
      %cst = arith.constant dense<0.000000e+00> : vector<8x8xf32>
      %22 = tpu.matmul %17, %19, %cst {dimension_numbers = #tpu.dot_dimension_numbers<[1], [1], [0], [0], [0, 0, 1, 0], [], []>} : vector<8x32xbf16>, vector<8x32xbf16>, vector<8x8xf32> -> vector<8x8xf32>
      %23 = vector.broadcast %13 : vector<1x8xf32> to vector<8x8xf32>
      %24 = arith.addf %22, %23 : vector<8x8xf32>
      %25 = vector.extract_strided_slice %14 {offsets = [0, 0], sizes = [8, 1], strides = [1, 1]} : vector<8x4xf32> to vector<8x1xf32>
      %cst_20 = arith.constant dense<0xFF800000> : vector<8xf32>
      %26 = vector.multi_reduction <maximumf>, %24, %cst_20 [1] : vector<8x8xf32> to vector<8xf32>
      %27 = vector.shape_cast %26 : vector<8xf32> to vector<8x1xf32>
      %28 = arith.maximumf %25, %27 : vector<8x1xf32>
      %29 = arith.subf %25, %28 : vector<8x1xf32>
      %30 = math.exp %29 : vector<8x1xf32>
      %31 = vector.broadcast %28 : vector<8x1xf32> to vector<8x8xf32>
      %32 = arith.subf %24, %31 : vector<8x8xf32>
      %33 = math.exp %32 : vector<8x8xf32>
      %34 = vector.extract_strided_slice %15 {offsets = [0, 0], sizes = [8, 1], strides = [1, 1]} : vector<8x4xf32> to vector<8x1xf32>
      %35 = arith.mulf %30, %34 : vector<8x1xf32>
      %cst_21 = arith.constant dense<0.000000e+00> : vector<8xf32>
      %36 = vector.multi_reduction <add>, %33, %cst_21 [1] : vector<8x8xf32> to vector<8xf32>
      %37 = vector.shape_cast %36 : vector<8xf32> to vector<8x1xf32>
      %38 = arith.addf %35, %37 : vector<8x1xf32>
      %39 = arith.truncf %33 : vector<8x8xf32> to vector<8x8xbf16>
      %cst_22 = arith.constant dense<0.000000e+00> : vector<8x32xf32>
      %40 = tpu.matmul %39, %21, %cst_22 {dimension_numbers = #tpu.dot_dimension_numbers<[1], [0], [0], [1], [0, 0, 1, 1], [], []>} : vector<8x8xbf16>, vector<8x32xbf16>, vector<8x32xf32> -> vector<8x32xf32>
      %c0_23 = arith.constant 0 : index
      %c0_24 = arith.constant 0 : index
      %c0_25 = arith.constant 0 : index
      %41 = vector.load %arg11[%c0_23, %c0_24, %c0_25] : memref<4x8x32xf32, #tpu.memory_space<vmem>>, vector<1x8x32xf32>
      %42 = vector.shape_cast %41 : vector<1x8x32xf32> to vector<8x32xf32>
      %43 = vector.broadcast %30 : vector<8x1xf32> to vector<8x32xf32>
      %44 = arith.mulf %43, %42 : vector<8x32xf32>
      %45 = arith.addf %44, %40 : vector<8x32xf32>
      %c0_26 = arith.constant 0 : index
      %c0_27 = arith.constant 0 : index
      %c0_28 = arith.constant 0 : index
      %46 = vector.load %arg11[%c0_26, %c0_27, %c0_28] : memref<4x8x32xf32, #tpu.memory_space<vmem>>, vector<1x8x32xf32>
      %47 = vector.shape_cast %46 : vector<1x8x32xf32> to vector<8x32xf32>
      %48 = vector.shape_cast %45 : vector<8x32xf32> to vector<1x8x32xf32>
      tpu.vector_store %arg11[%c0_26, %c0_27, %c0_28], %48 {strides = array<i32>} : memref<4x8x32xf32, #tpu.memory_space<vmem>>, vector<1x8x32xf32>,
      %c0_29 = arith.constant 0 : index
      %c0_30 = arith.constant 0 : index
      %c32 = arith.constant 32 : index
      %49 = vector.load %arg4[%c0_29, %c0_30, %c32] : memref<1x8x128xbf16, #tpu.memory_space<vmem>>, vector<1x8x32xbf16>
      %50 = vector.shape_cast %49 : vector<1x8x32xbf16> to vector<8x32xbf16>
      %c0_31 = arith.constant 0 : index
      %c0_32 = arith.constant 0 : index
      %c32_33 = arith.constant 32 : index
      %51 = vector.load %arg5[%c0_31, %c0_32, %c32_33] : memref<1x8x128xbf16, #tpu.memory_space<vmem>>, vector<1x8x32xbf16>
      %52 = vector.shape_cast %51 : vector<1x8x32xbf16> to vector<8x32xbf16>
      %c0_34 = arith.constant 0 : index
      %c0_35 = arith.constant 0 : index
      %c32_36 = arith.constant 32 : index
      %53 = vector.load %arg6[%c0_34, %c0_35, %c32_36] : memref<1x8x128xbf16, #tpu.memory_space<vmem>>, vector<1x8x32xbf16>
      %54 = vector.shape_cast %53 : vector<1x8x32xbf16> to vector<8x32xbf16>
      %cst_37 = arith.constant dense<0.000000e+00> : vector<8x8xf32>
      %55 = tpu.matmul %50, %52, %cst_37 {dimension_numbers = #tpu.dot_dimension_numbers<[1], [1], [0], [0], [0, 0, 1, 0], [], []>} : vector<8x32xbf16>, vector<8x32xbf16>, vector<8x8xf32> -> vector<8x8xf32>
      %56 = vector.broadcast %13 : vector<1x8xf32> to vector<8x8xf32>
      %57 = arith.addf %55, %56 : vector<8x8xf32>
      %58 = vector.extract_strided_slice %14 {offsets = [0, 1], sizes = [8, 1], strides = [1, 1]} : vector<8x4xf32> to vector<8x1xf32>
      %cst_38 = arith.constant dense<0xFF800000> : vector<8xf32>
      %59 = vector.multi_reduction <maximumf>, %57, %cst_38 [1] : vector<8x8xf32> to vector<8xf32>
      %60 = vector.shape_cast %59 : vector<8xf32> to vector<8x1xf32>
      %61 = arith.maximumf %58, %60 : vector<8x1xf32>
      %62 = arith.subf %58, %61 : vector<8x1xf32>
      %63 = math.exp %62 : vector<8x1xf32>
      %64 = vector.broadcast %61 : vector<8x1xf32> to vector<8x8xf32>
      %65 = arith.subf %57, %64 : vector<8x8xf32>
      %66 = math.exp %65 : vector<8x8xf32>
      %67 = vector.extract_strided_slice %15 {offsets = [0, 1], sizes = [8, 1], strides = [1, 1]} : vector<8x4xf32> to vector<8x1xf32>
      %68 = arith.mulf %63, %67 : vector<8x1xf32>
      %cst_39 = arith.constant dense<0.000000e+00> : vector<8xf32>
      %69 = vector.multi_reduction <add>, %66, %cst_39 [1] : vector<8x8xf32> to vector<8xf32>
      %70 = vector.shape_cast %69 : vector<8xf32> to vector<8x1xf32>
      %71 = arith.addf %68, %70 : vector<8x1xf32>
      %72 = arith.truncf %66 : vector<8x8xf32> to vector<8x8xbf16>
      %cst_40 = arith.constant dense<0.000000e+00> : vector<8x32xf32>
      %73 = tpu.matmul %72, %54, %cst_40 {dimension_numbers = #tpu.dot_dimension_numbers<[1], [0], [0], [1], [0, 0, 1, 1], [], []>} : vector<8x8xbf16>, vector<8x32xbf16>, vector<8x32xf32> -> vector<8x32xf32>
      %c1 = arith.constant 1 : index
      %c0_41 = arith.constant 0 : index
      %c0_42 = arith.constant 0 : index
      %74 = vector.load %arg11[%c1, %c0_41, %c0_42] : memref<4x8x32xf32, #tpu.memory_space<vmem>>, vector<1x8x32xf32>
      %75 = vector.shape_cast %74 : vector<1x8x32xf32> to vector<8x32xf32>
      %76 = vector.broadcast %63 : vector<8x1xf32> to vector<8x32xf32>
      %77 = arith.mulf %76, %75 : vector<8x32xf32>
      %78 = arith.addf %77, %73 : vector<8x32xf32>
      %c1_43 = arith.constant 1 : index
      %c0_44 = arith.constant 0 : index
      %c0_45 = arith.constant 0 : index
      %79 = vector.load %arg11[%c1_43, %c0_44, %c0_45] : memref<4x8x32xf32, #tpu.memory_space<vmem>>, vector<1x8x32xf32>
      %80 = vector.shape_cast %79 : vector<1x8x32xf32> to vector<8x32xf32>
      %81 = vector.shape_cast %78 : vector<8x32xf32> to vector<1x8x32xf32>
      tpu.vector_store %arg11[%c1_43, %c0_44, %c0_45], %81 {strides = array<i32>} : memref<4x8x32xf32, #tpu.memory_space<vmem>>, vector<1x8x32xf32>,
      %c0_46 = arith.constant 0 : index
      %c0_47 = arith.constant 0 : index
      %c64 = arith.constant 64 : index
      %82 = vector.load %arg4[%c0_46, %c0_47, %c64] : memref<1x8x128xbf16, #tpu.memory_space<vmem>>, vector<1x8x32xbf16>
      %83 = vector.shape_cast %82 : vector<1x8x32xbf16> to vector<8x32xbf16>
      %c0_48 = arith.constant 0 : index
      %c0_49 = arith.constant 0 : index
      %c64_50 = arith.constant 64 : index
      %84 = vector.load %arg5[%c0_48, %c0_49, %c64_50] : memref<1x8x128xbf16, #tpu.memory_space<vmem>>, vector<1x8x32xbf16>
      %85 = vector.shape_cast %84 : vector<1x8x32xbf16> to vector<8x32xbf16>
      %c0_51 = arith.constant 0 : index
      %c0_52 = arith.constant 0 : index
      %c64_53 = arith.constant 64 : index
      %86 = vector.load %arg6[%c0_51, %c0_52, %c64_53] : memref<1x8x128xbf16, #tpu.memory_space<vmem>>, vector<1x8x32xbf16>
      %87 = vector.shape_cast %86 : vector<1x8x32xbf16> to vector<8x32xbf16>
      %cst_54 = arith.constant dense<0.000000e+00> : vector<8x8xf32>
      %88 = tpu.matmul %83, %85, %cst_54 {dimension_numbers = #tpu.dot_dimension_numbers<[1], [1], [0], [0], [0, 0, 1, 0], [], []>} : vector<8x32xbf16>, vector<8x32xbf16>, vector<8x8xf32> -> vector<8x8xf32>
      %89 = vector.broadcast %13 : vector<1x8xf32> to vector<8x8xf32>
      %90 = arith.addf %88, %89 : vector<8x8xf32>
      %91 = vector.extract_strided_slice %14 {offsets = [0, 2], sizes = [8, 1], strides = [1, 1]} : vector<8x4xf32> to vector<8x1xf32>
      %cst_55 = arith.constant dense<0xFF800000> : vector<8xf32>
      %92 = vector.multi_reduction <maximumf>, %90, %cst_55 [1] : vector<8x8xf32> to vector<8xf32>
      %93 = vector.shape_cast %92 : vector<8xf32> to vector<8x1xf32>
      %94 = arith.maximumf %91, %93 : vector<8x1xf32>
      %95 = arith.subf %91, %94 : vector<8x1xf32>
      %96 = math.exp %95 : vector<8x1xf32>
      %97 = vector.broadcast %94 : vector<8x1xf32> to vector<8x8xf32>
      %98 = arith.subf %90, %97 : vector<8x8xf32>
      %99 = math.exp %98 : vector<8x8xf32>
      %100 = vector.extract_strided_slice %15 {offsets = [0, 2], sizes = [8, 1], strides = [1, 1]} : vector<8x4xf32> to vector<8x1xf32>
      %101 = arith.mulf %96, %100 : vector<8x1xf32>
      %cst_56 = arith.constant dense<0.000000e+00> : vector<8xf32>
      %102 = vector.multi_reduction <add>, %99, %cst_56 [1] : vector<8x8xf32> to vector<8xf32>
      %103 = vector.shape_cast %102 : vector<8xf32> to vector<8x1xf32>
      %104 = arith.addf %101, %103 : vector<8x1xf32>
      %105 = arith.truncf %99 : vector<8x8xf32> to vector<8x8xbf16>
      %cst_57 = arith.constant dense<0.000000e+00> : vector<8x32xf32>
      %106 = tpu.matmul %105, %87, %cst_57 {dimension_numbers = #tpu.dot_dimension_numbers<[1], [0], [0], [1], [0, 0, 1, 1], [], []>} : vector<8x8xbf16>, vector<8x32xbf16>, vector<8x32xf32> -> vector<8x32xf32>
      %c2 = arith.constant 2 : index
      %c0_58 = arith.constant 0 : index
      %c0_59 = arith.constant 0 : index
      %107 = vector.load %arg11[%c2, %c0_58, %c0_59] : memref<4x8x32xf32, #tpu.memory_space<vmem>>, vector<1x8x32xf32>
      %108 = vector.shape_cast %107 : vector<1x8x32xf32> to vector<8x32xf32>
      %109 = vector.broadcast %96 : vector<8x1xf32> to vector<8x32xf32>
      %110 = arith.mulf %109, %108 : vector<8x32xf32>
      %111 = arith.addf %110, %106 : vector<8x32xf32>
      %c2_60 = arith.constant 2 : index
      %c0_61 = arith.constant 0 : index
      %c0_62 = arith.constant 0 : index
      %112 = vector.load %arg11[%c2_60, %c0_61, %c0_62] : memref<4x8x32xf32, #tpu.memory_space<vmem>>, vector<1x8x32xf32>
      %113 = vector.shape_cast %112 : vector<1x8x32xf32> to vector<8x32xf32>
      %114 = vector.shape_cast %111 : vector<8x32xf32> to vector<1x8x32xf32>
      tpu.vector_store %arg11[%c2_60, %c0_61, %c0_62], %114 {strides = array<i32>} : memref<4x8x32xf32, #tpu.memory_space<vmem>>, vector<1x8x32xf32>,
      %c0_63 = arith.constant 0 : index
      %c0_64 = arith.constant 0 : index
      %c96 = arith.constant 96 : index
      %115 = vector.load %arg4[%c0_63, %c0_64, %c96] : memref<1x8x128xbf16, #tpu.memory_space<vmem>>, vector<1x8x32xbf16>
      %116 = vector.shape_cast %115 : vector<1x8x32xbf16> to vector<8x32xbf16>
      %c0_65 = arith.constant 0 : index
      %c0_66 = arith.constant 0 : index
      %c96_67 = arith.constant 96 : index
      %117 = vector.load %arg5[%c0_65, %c0_66, %c96_67] : memref<1x8x128xbf16, #tpu.memory_space<vmem>>, vector<1x8x32xbf16>
      %118 = vector.shape_cast %117 : vector<1x8x32xbf16> to vector<8x32xbf16>
      %c0_68 = arith.constant 0 : index
      %c0_69 = arith.constant 0 : index
      %c96_70 = arith.constant 96 : index
      %119 = vector.load %arg6[%c0_68, %c0_69, %c96_70] : memref<1x8x128xbf16, #tpu.memory_space<vmem>>, vector<1x8x32xbf16>
      %120 = vector.shape_cast %119 : vector<1x8x32xbf16> to vector<8x32xbf16>
      %cst_71 = arith.constant dense<0.000000e+00> : vector<8x8xf32>
      %121 = tpu.matmul %116, %118, %cst_71 {dimension_numbers = #tpu.dot_dimension_numbers<[1], [1], [0], [0], [0, 0, 1, 0], [], []>} : vector<8x32xbf16>, vector<8x32xbf16>, vector<8x8xf32> -> vector<8x8xf32>
      %122 = vector.broadcast %13 : vector<1x8xf32> to vector<8x8xf32>
      %123 = arith.addf %121, %122 : vector<8x8xf32>
      %124 = vector.extract_strided_slice %14 {offsets = [0, 3], sizes = [8, 1], strides = [1, 1]} : vector<8x4xf32> to vector<8x1xf32>
      %cst_72 = arith.constant dense<0xFF800000> : vector<8xf32>
      %125 = vector.multi_reduction <maximumf>, %123, %cst_72 [1] : vector<8x8xf32> to vector<8xf32>
      %126 = vector.shape_cast %125 : vector<8xf32> to vector<8x1xf32>
      %127 = arith.maximumf %124, %126 : vector<8x1xf32>
      %128 = arith.subf %124, %127 : vector<8x1xf32>
      %129 = math.exp %128 : vector<8x1xf32>
      %130 = vector.broadcast %127 : vector<8x1xf32> to vector<8x8xf32>
      %131 = arith.subf %123, %130 : vector<8x8xf32>
      %132 = math.exp %131 : vector<8x8xf32>
      %133 = vector.extract_strided_slice %15 {offsets = [0, 3], sizes = [8, 1], strides = [1, 1]} : vector<8x4xf32> to vector<8x1xf32>
      %134 = arith.mulf %129, %133 : vector<8x1xf32>
      %cst_73 = arith.constant dense<0.000000e+00> : vector<8xf32>
      %135 = vector.multi_reduction <add>, %132, %cst_73 [1] : vector<8x8xf32> to vector<8xf32>
      %136 = vector.shape_cast %135 : vector<8xf32> to vector<8x1xf32>
      %137 = arith.addf %134, %136 : vector<8x1xf32>
      %138 = arith.truncf %132 : vector<8x8xf32> to vector<8x8xbf16>
      %cst_74 = arith.constant dense<0.000000e+00> : vector<8x32xf32>
      %139 = tpu.matmul %138, %120, %cst_74 {dimension_numbers = #tpu.dot_dimension_numbers<[1], [0], [0], [1], [0, 0, 1, 1], [], []>} : vector<8x8xbf16>, vector<8x32xbf16>, vector<8x32xf32> -> vector<8x32xf32>
      %c3 = arith.constant 3 : index
      %c0_75 = arith.constant 0 : index
      %c0_76 = arith.constant 0 : index
      %140 = vector.load %arg11[%c3, %c0_75, %c0_76] : memref<4x8x32xf32, #tpu.memory_space<vmem>>, vector<1x8x32xf32>
      %141 = vector.shape_cast %140 : vector<1x8x32xf32> to vector<8x32xf32>
      %142 = vector.broadcast %129 : vector<8x1xf32> to vector<8x32xf32>
      %143 = arith.mulf %142, %141 : vector<8x32xf32>
      %144 = arith.addf %143, %139 : vector<8x32xf32>
      %c3_77 = arith.constant 3 : index
      %c0_78 = arith.constant 0 : index
      %c0_79 = arith.constant 0 : index
      %145 = vector.load %arg11[%c3_77, %c0_78, %c0_79] : memref<4x8x32xf32, #tpu.memory_space<vmem>>, vector<1x8x32xf32>
      %146 = vector.shape_cast %145 : vector<1x8x32xf32> to vector<8x32xf32>
      %147 = vector.shape_cast %144 : vector<8x32xf32> to vector<1x8x32xf32>
      tpu.vector_store %arg11[%c3_77, %c0_78, %c0_79], %147 {strides = array<i32>} : memref<4x8x32xf32, #tpu.memory_space<vmem>>, vector<1x8x32xf32>,
      %148 = tpu.concatenate %28, %61, %94, %127 in 1 : vector<8x1xf32>, vector<8x1xf32>, vector<8x1xf32>, vector<8x1xf32> -> vector<8x4xf32>
      %c0_80 = arith.constant 0 : index
      %c0_81 = arith.constant 0 : index
      %149 = vector.load %arg9[%c0_80, %c0_81] : memref<8x4xf32, #tpu.memory_space<vmem>>, vector<8x4xf32>
      tpu.vector_store %arg9[%c0_80, %c0_81], %148 {strides = array<i32>} : memref<8x4xf32, #tpu.memory_space<vmem>>, vector<8x4xf32>,
      %150 = tpu.concatenate %38, %71, %104, %137 in 1 : vector<8x1xf32>, vector<8x1xf32>, vector<8x1xf32>, vector<8x1xf32> -> vector<8x4xf32>
      %c0_82 = arith.constant 0 : index
      %c0_83 = arith.constant 0 : index
      %151 = vector.load %arg10[%c0_82, %c0_83] : memref<8x4xf32, #tpu.memory_space<vmem>>, vector<8x4xf32>
      tpu.vector_store %arg10[%c0_82, %c0_83], %150 {strides = array<i32>} : memref<8x4xf32, #tpu.memory_space<vmem>>, vector<8x4xf32>,
    } else {
    }
    %c0_i32_3 = arith.constant 0 : i32
    %9 = arith.cmpi eq, %arg2, %c0_i32_3 : i32
    %10 = arith.extui %9 : i1 to i32
    %c0_i32_4 = arith.constant 0 : i32
    %11 = arith.cmpi ne, %10, %c0_i32_4 : i32
    scf.if %11 {
      %c0 = arith.constant 0 : index
      %c0_5 = arith.constant 0 : index
      %12 = vector.load %arg10[%c0, %c0_5] : memref<8x4xf32, #tpu.memory_space<vmem>>, vector<8x4xf32>
      %13 = tpu.reciprocal %12 {approx = true} : vector<8x4xf32> -> vector<8x4xf32>
      %c0_6 = arith.constant 0 : index
      %c0_7 = arith.constant 0 : index
      %c0_8 = arith.constant 0 : index
      %14 = vector.load %arg11[%c0_6, %c0_7, %c0_8] : memref<4x8x32xf32, #tpu.memory_space<vmem>>, vector<1x8x32xf32>
      %15 = vector.shape_cast %14 : vector<1x8x32xf32> to vector<8x32xf32>
      %16 = vector.extract_strided_slice %13 {offsets = [0, 0], sizes = [8, 1], strides = [1, 1]} : vector<8x4xf32> to vector<8x1xf32>
      %17 = vector.broadcast %16 : vector<8x1xf32> to vector<8x32xf32>
      %18 = arith.mulf %15, %17 : vector<8x32xf32>
      %c1 = arith.constant 1 : index
      %c0_9 = arith.constant 0 : index
      %c0_10 = arith.constant 0 : index
      %19 = vector.load %arg11[%c1, %c0_9, %c0_10] : memref<4x8x32xf32, #tpu.memory_space<vmem>>, vector<1x8x32xf32>
      %20 = vector.shape_cast %19 : vector<1x8x32xf32> to vector<8x32xf32>
      %21 = vector.extract_strided_slice %13 {offsets = [0, 1], sizes = [8, 1], strides = [1, 1]} : vector<8x4xf32> to vector<8x1xf32>
      %22 = vector.broadcast %21 : vector<8x1xf32> to vector<8x32xf32>
      %23 = arith.mulf %20, %22 : vector<8x32xf32>
      %c2 = arith.constant 2 : index
      %c0_11 = arith.constant 0 : index
      %c0_12 = arith.constant 0 : index
      %24 = vector.load %arg11[%c2, %c0_11, %c0_12] : memref<4x8x32xf32, #tpu.memory_space<vmem>>, vector<1x8x32xf32>
      %25 = vector.shape_cast %24 : vector<1x8x32xf32> to vector<8x32xf32>
      %26 = vector.extract_strided_slice %13 {offsets = [0, 2], sizes = [8, 1], strides = [1, 1]} : vector<8x4xf32> to vector<8x1xf32>
      %27 = vector.broadcast %26 : vector<8x1xf32> to vector<8x32xf32>
      %28 = arith.mulf %25, %27 : vector<8x32xf32>
      %c3 = arith.constant 3 : index
      %c0_13 = arith.constant 0 : index
      %c0_14 = arith.constant 0 : index
      %29 = vector.load %arg11[%c3, %c0_13, %c0_14] : memref<4x8x32xf32, #tpu.memory_space<vmem>>, vector<1x8x32xf32>
      %30 = vector.shape_cast %29 : vector<1x8x32xf32> to vector<8x32xf32>
      %31 = vector.extract_strided_slice %13 {offsets = [0, 3], sizes = [8, 1], strides = [1, 1]} : vector<8x4xf32> to vector<8x1xf32>
      %32 = vector.broadcast %31 : vector<8x1xf32> to vector<8x32xf32>
      %33 = arith.mulf %30, %32 : vector<8x32xf32>
      %34 = tpu.concatenate %18, %23, %28, %33 in 1 : vector<8x32xf32>, vector<8x32xf32>, vector<8x32xf32>, vector<8x32xf32> -> vector<8x128xf32>
      %35 = arith.truncf %34 : vector<8x128xf32> to vector<8x128xbf16>
      %c0_15 = arith.constant 0 : index
      %c0_16 = arith.constant 0 : index
      %c0_17 = arith.constant 0 : index
      %36 = vector.load %arg8[%c0_15, %c0_16, %c0_17] : memref<1x8x128xbf16, #tpu.memory_space<vmem>>, vector<1x8x128xbf16>
      %37 = vector.shape_cast %36 : vector<1x8x128xbf16> to vector<8x128xbf16>
      %38 = vector.shape_cast %35 : vector<8x128xbf16> to vector<1x8x128xbf16>
      tpu.vector_store %arg8[%c0_15, %c0_16, %c0_17], %38 {strides = array<i32>} : memref<1x8x128xbf16, #tpu.memory_space<vmem>>, vector<1x8x128xbf16>,
    } else {
    }
    return
  }
  func.func @transform_0(%arg0: i32, %arg1: i32, %arg2: i32, %arg3: memref<2x1xi32, #tpu.memory_space<smem>>) -> (i32, i32, i32) {
    %c0_i32 = arith.constant 0 : i32
    %c0_i32_0 = arith.constant 0 : i32
    return %arg0, %arg1, %c0_i32 : i32, i32, i32
  }
  func.func @transform_1(%arg0: i32, %arg1: i32, %arg2: i32, %arg3: memref<2x1xi32, #tpu.memory_space<smem>>) -> (i32, i32, i32) {
    %c1_i32 = arith.constant 1 : i32
    %c0_i32 = arith.constant 0 : i32
    return %arg0, %arg2, %c1_i32 : i32, i32, i32
  }
  func.func @transform_2(%arg0: i32, %arg1: i32, %arg2: i32, %arg3: memref<2x1xi32, #tpu.memory_space<smem>>) -> (i32, i32, i32) {
    %c2_i32 = arith.constant 2 : i32
    %c0_i32 = arith.constant 0 : i32
    return %arg0, %arg2, %c2_i32 : i32, i32, i32
  }
  func.func @transform_3(%arg0: i32, %arg1: i32, %arg2: i32, %arg3: memref<2x1xi32, #tpu.memory_space<smem>>) -> (i32, i32, i32) {
    %c0_i32 = arith.constant 0 : i32
    %c0_i32_0 = arith.constant 0 : i32
    return %arg0, %c0_i32, %arg2 : i32, i32, i32
  }
  func.func @transform_4(%arg0: i32, %arg1: i32, %arg2: i32, %arg3: memref<2x1xi32, #tpu.memory_space<smem>>) -> (i32, i32, i32) {
    %c0_i32 = arith.constant 0 : i32
    %c0_i32_0 = arith.constant 0 : i32
    return %arg0, %arg1, %c0_i32 : i32, i32, i32
  }
}

</mosaic_0001>

<bundles_post_ra>
// kernel: custom_longformer_forward.10
= control target key start
LH: loop header
LB: loop body
LE: loop exit
PB: predicated region body
PF: predicated region fallthrough
CT: control target
= control target key end

     0   :  { %v274_v0 = vmov 0.0   ;;  %vm275_vm0 = vmmov 0   ;;  %s353_s1 = inlined_call_operand.vmem [shape: bf16[128,128], index: 1, kind: input, shape index: {}]   ;;  %s354_s0 = inlined_call_operand.vmem [shape: bf16[16,128], index: 0, kind: input, shape index: {}]   ;;  %s355_s3 = inlined_call_operand.vmem [shape: bf16[16,128], index: 3, kind: input, shape index: {}]   ;;  %s356_s2 = inlined_call_operand.vmem [shape: f32[1,128], index: 2, kind: input, shape index: {}]   ;;  %s357_s4 = inlined_call_operand.vmem [shape: f32[1,128], index: 4, kind: input, shape index: {}]   ;;  %s358_s5 = inlined_call_operand.vmem [shape: f32[1,128], index: 5, kind: input, shape index: {}]   ;;  %s359_s6 = inlined_call_operand.vmem [shape: bf16[16,128], index: 6, kind: output, shape index: {}]  }
   0x1   :  { %239 = vmatprep.subr.bf16.mxu0 %v274_v0  ;;  %v261_v1 = vld [vmem:[%s353_s1] sm:$0xff]   ;;  %255 = vmatprep.mubr.msk.bf16.mxu0 %vm275_vm0, %v274_v0  ;;  %v262_v2 = vld [vmem:[%s353_s1 + $0x8] sm:$0xff]   ;;  %v263_v3 = vld [vmem:[%s353_s1 + $0x10] sm:$0xff]  }
   0x2   :  { %240 = vmatpush3.bf16.msra.mxu0 %v261_v1  ;;  %v264_v4 = vld [vmem:[%s353_s1 + $0x18] sm:$0xff]   ;;  %v265_v5 = vld [vmem:[%s353_s1 + $0x20] sm:$0xff]   ;;  %v266_v6 = vld [vmem:[%s353_s1 + $0x28] sm:$0xff]  }
   0x3   :  { %241 = vmatprep.subr.bf16.mxu0 %v274_v0  ;;  %v267_v7 = vld [vmem:[%s353_s1 + $0x30] sm:$0xff]   ;;  %v268_v8 = vld [vmem:[%s353_s1 + $0x38] sm:$0xff]   ;;  %v269_v9 = vld [vmem:[%s354_s0] sm:$0xff]  }
   0x4   :  { %v222_v10 = vld [vmem:[%s355_s3] sm:$0xff]  }
   0x5   :  { %v205_v11 = vld [vmem:[%s356_s2] ss:$0 sm:$0xff]  ;;  %v223_v12 = vunpack.c.l.bf16 %v222_v10  ;;  %v224_v20 = vunpack.c.h.bf16 %v222_v10 }
   0x6   :  { %242 = vmatpush3.bf16.msra.mxu0 %v262_v2  ;;  %v215_v38 = vld [vmem:[%s357_s4] ss:$0 sm:$0xff] }
   0x7   :  { %243 = vmatprep.subr.bf16.mxu0 %v274_v0  ;;  %v216_v42 = vld [vmem:[%s358_s5] ss:$0 sm:$0xff] }
   0xa   :  { %244 = vmatpush3.bf16.msra.mxu0 %v263_v3 }
   0xb   :  { %245 = vmatprep.subr.bf16.mxu0 %v274_v0 }
   0xe   :  { %246 = vmatpush3.bf16.msra.mxu0 %v264_v4 }
   0xf   :  { %247 = vmatprep.subr.bf16.mxu0 %v274_v0 }
  0x12   :  { %248 = vmatpush3.bf16.msra.mxu0 %v265_v5 }
  0x13   :  { %249 = vmatprep.subr.bf16.mxu0 %v274_v0 }
  0x16   :  { %250 = vmatpush3.bf16.msra.mxu0 %v266_v6 }
  0x17   :  { %251 = vmatprep.subr.bf16.mxu0 %v274_v0 }
  0x1a   :  { %252 = vmatpush3.bf16.msra.mxu0 %v267_v7 }
  0x1b   :  { %253 = vmatprep.subr.bf16.mxu0 %v274_v0 }
  0x1e   :  { %254 = vmatpush3.bf16.msra.mxu0 %v268_v8 }
  0x21   :  { %256 = vmatmul.mubr.bf16.vlgmr.msra.gmra.mrb[0].mxu0 %v269_v9 }
  0xf4   :  { %v137_v13 = vpop.f32.mrb[0].mxu0 }
  0xf5   :  { %v138_v14 = vadd.f32 %v205_v11, %v137_v13  ;;  %v257_v15 = vpop.f32.mrb[1].mxu0 }
  0xf6   :  { %v140_v16 = vpop.f32.mrb[2].mxu0 }
  0xf7   :  { %v141_v17 = vadd.f32 %v205_v11, %v140_v16  ;;  %v258_v18 = vpop.f32.mrb[3].mxu0  ;;  %v148_v19 = vadd.f32 %v223_v12, %v138_v14 }
  0xf9   :  { %150 = vadd.xlane.f32.xlu0 %v148_v19  ;;  %v149_v21 = vadd.f32 %v224_v20, %v141_v17 }
  0xfd   :  { %152 = vadd.xlane.f32.xlu0 %v149_v21 }
 0x186   :  { %v151_v22 = vpop.xlane.xlu0 %150 }
 0x187   :  { %v155_v23 = vmul.f32 0.0078125, %v151_v22 }
 0x189   :  { %v157_v24 = vsub.f32 %v148_v19, %v155_v23 }
 0x18a   :  { %v153_v25 = vpop.xlane.xlu0 %152 }
 0x18b   :  { %v156_v26 = vmul.f32 0.0078125, %v153_v25  ;;  %v159_v27 = vmul.f32 %v157_v24, %v157_v24 }
 0x18d   :  { %v158_v28 = vsub.f32 %v149_v21, %v156_v26  ;;  %161 = vadd.xlane.f32.xlu1 %v159_v27 }
 0x18f   :  { %v160_v29 = vmul.f32 %v158_v28, %v158_v28 }
 0x191   :  { %163 = vadd.xlane.f32.xlu1 %v160_v29 }
 0x21a   :  { %v162_v30 = vpop.xlane.xlu1 %161 }
 0x21b   :  { %v165_v31 = vmul.f32 0.0078125, %v162_v30 }
 0x21d   :  { %v167_v32 = vadd.f32 1e-05, %v165_v31 }
 0x21e   :  { %v164_v33 = vpop.xlane.xlu1 %163 }
 0x21f   :  { %270 = vrsqrt.f32 %v167_v32  ;;  %v166_v34 = vmul.f32 0.0078125, %v164_v33 }
 0x221   :  { %v168_v35 = vadd.f32 1e-05, %v166_v34 }
 0x223   :  { %272 = vrsqrt.f32 %v168_v35 }
 0x229   :  { %v271_v36 = vpop.eup %270 }
 0x22a   :  { %v171_v37 = vmul.f32 %v271_v36, %v157_v24 }
 0x22c   :  { %v180_v40 = vmul.f32 %v215_v38, %v171_v37 }
 0x22d   :  { %v273_v39 = vpop.eup %272 }
 0x22e   :  { %v172_v41 = vmul.f32 %v273_v39, %v158_v28  ;;  %v189_v44 = vadd.f32 %v216_v42, %v180_v40 }
 0x230   :  { %v181_v43 = vmul.f32 %v215_v38, %v172_v41 }
 0x232   :  { %v190_v45 = vadd.f32 %v216_v42, %v181_v43 }
 0x234   :  { %v228_v46 = vpack.c.bf16 %v190_v45, %v189_v44 }
 0x236   :  { %229 = vst [vmem:[%s359_s6] sm:$0xff] %v228_v46  }

// kernel: custom_longformer_forward.8
= control target key start
LH: loop header
LB: loop body
LE: loop exit
PB: predicated region body
PF: predicated region fallthrough
CT: control target
= control target key end

     0   :  { %v410_v0 = vmov 0.0   ;;  %vm411_vm0 = vmmov 0   ;;  %v412_v3 = vmov 0   ;;  %v51_v27 = vlaneseq  ;;  %s523_s1 = inlined_call_operand.vmem [shape: bf16[128,384], index: 1, kind: input, shape index: {}]   ;;  %s524_s0 = inlined_call_operand.vmem [shape: bf16[16,128], index: 0, kind: input, shape index: {}]   ;;  %s525_s2 = inlined_call_operand.vmem [shape: f32[1,384], index: 2, kind: input, shape index: {}]   ;;  %s526_s3 = inlined_call_operand.vmem [shape: bf16[16,384], index: 3, kind: output, shape index: {}]  }
   0x1   :  { %354 = vmatprep.subr.bf16.mxu1 %v410_v0  ;;  %v377_v1 = vld [vmem:[%s523_s1 + $0x4] ss:$12 sps:$4 sm:$0xff]   ;;  %370 = vmatprep.mubr.msk.bf16.mxu1 %vm411_vm0, %v410_v0  ;;  %v379_v2 = vld [vmem:[%s523_s1 + $0x8] ss:$12 sps:$4 sm:$0xff]   ;;  %v380_v4 = vld [vmem:[%s523_s1] ss:$12 sps:$4 sm:$0xff]  }
   0x2   :  { %232 = vmatprep.mubr.bf16.mxu0 %v412_v3  ;;  %200 = vmatprep.subr.bf16.mxu0 %v377_v1  ;;  %v381_v5 = vld [vmem:[%s523_s1 + $0x1c] ss:$12 sps:$4 sm:$0xff]   ;;  %v383_v6 = vld [vmem:[%s523_s1 + $0x20] ss:$12 sps:$4 sm:$0xff]   ;;  %v384_v7 = vld [vmem:[%s523_s1 + $0x18] ss:$12 sps:$4 sm:$0xff]  }
   0x3   :  { %355 = vmatpush3.bf16.msra.mxu1 %v379_v2  ;;  %201 = vmatpush1.bf16.msra.mxu0 %v380_v4  ;;  %v385_v8 = vld [vmem:[%s523_s1 + $0x34] ss:$12 sps:$4 sm:$0xff]   ;;  %v387_v9 = vld [vmem:[%s523_s1 + $0x38] ss:$12 sps:$4 sm:$0xff]   ;;  %v388_v10 = vld [vmem:[%s523_s1 + $0x30] ss:$12 sps:$4 sm:$0xff]  }
   0x4   :  { %356 = vmatprep.subr.bf16.mxu1 %v410_v0  ;;  %202 = vmatprep.subr.bf16.mxu0 %v381_v5  ;;  %v389_v11 = vld [vmem:[%s523_s1 + $0x4c] ss:$12 sps:$4 sm:$0xff]   ;;  %v391_v12 = vld [vmem:[%s523_s1 + $0x50] ss:$12 sps:$4 sm:$0xff]   ;;  %v392_v13 = vld [vmem:[%s523_s1 + $0x48] ss:$12 sps:$4 sm:$0xff]  }
   0x5   :  { %v393_v14 = vld [vmem:[%s523_s1 + $0x64] ss:$12 sps:$4 sm:$0xff]   ;;  %v395_v15 = vld [vmem:[%s523_s1 + $0x68] ss:$12 sps:$4 sm:$0xff]   ;;  %v396_v16 = vld [vmem:[%s523_s1 + $0x60] ss:$12 sps:$4 sm:$0xff]  }
   0x6   :  { %v397_v17 = vld [vmem:[%s523_s1 + $0x7c] ss:$12 sps:$4 sm:$0xff]   ;;  %v399_v18 = vld [vmem:[%s523_s1 + $0x80] ss:$12 sps:$4 sm:$0xff]   ;;  %v400_v19 = vld [vmem:[%s523_s1 + $0x78] ss:$12 sps:$4 sm:$0xff]  }
   0x7   :  { %357 = vmatpush3.bf16.msra.mxu1 %v383_v6  ;;  %203 = vmatpush1.bf16.msra.mxu0 %v384_v7  ;;  %v401_v20 = vld [vmem:[%s523_s1 + $0x94] ss:$12 sps:$4 sm:$0xff]   ;;  %v403_v21 = vld [vmem:[%s523_s1 + $0x98] ss:$12 sps:$4 sm:$0xff]   ;;  %v404_v22 = vld [vmem:[%s523_s1 + $0x90] ss:$12 sps:$4 sm:$0xff]  }
   0x8   :  { %358 = vmatprep.subr.bf16.mxu1 %v410_v0  ;;  %204 = vmatprep.subr.bf16.mxu0 %v385_v8  ;;  %v405_v23 = vld [vmem:[%s523_s1 + $0xac] ss:$12 sps:$4 sm:$0xff]   ;;  %v407_v24 = vld [vmem:[%s523_s1 + $0xb0] ss:$12 sps:$4 sm:$0xff]   ;;  %v408_v25 = vld [vmem:[%s523_s1 + $0xa8] ss:$12 sps:$4 sm:$0xff]  }
   0x9   :  { %v409_v26 = vld [vmem:[%s524_s0] sm:$0xff]   ;;  %v52_v28 = vshrl.u32 %v51_v27, 7 }
   0xa   :  { %v49_v30 = vld [vmem:[%s525_s2] sm:$0x7] }
   0xb   :  { %359 = vmatpush3.bf16.msra.mxu1 %v387_v9  ;;  %205 = vmatpush1.bf16.msra.mxu0 %v388_v10  ;;  %v61_v29 = vsub.s32 2, %v52_v28  ;;  %v53_v31 = vsub.s32 0, %v52_v28  ;;  %v57_v32 = vsub.s32 1, %v52_v28 }
   0xc   :  { %360 = vmatprep.subr.bf16.mxu1 %v410_v0  ;;  %206 = vmatprep.subr.bf16.mxu0 %v389_v11 }
   0xd   :  { %v62_v33 = vrot.slane %v49_v30, %v61_v29  ;;  %v54_v34 = vrot.slane %v49_v30, %v53_v31  ;;  %v58_v35 = vrot.slane %v49_v30, %v57_v32 }
   0xf   :  { %361 = vmatpush3.bf16.msra.mxu1 %v391_v12  ;;  %207 = vmatpush1.bf16.msra.mxu0 %v392_v13 }
  0x10   :  { %362 = vmatprep.subr.bf16.mxu1 %v410_v0  ;;  %208 = vmatprep.subr.bf16.mxu0 %v393_v14 }
  0x13   :  { %363 = vmatpush3.bf16.msra.mxu1 %v395_v15  ;;  %209 = vmatpush1.bf16.msra.mxu0 %v396_v16 }
  0x14   :  { %364 = vmatprep.subr.bf16.mxu1 %v410_v0  ;;  %210 = vmatprep.subr.bf16.mxu0 %v397_v17 }
  0x17   :  { %365 = vmatpush3.bf16.msra.mxu1 %v399_v18  ;;  %211 = vmatpush1.bf16.msra.mxu0 %v400_v19 }
  0x18   :  { %366 = vmatprep.subr.bf16.mxu1 %v410_v0  ;;  %212 = vmatprep.subr.bf16.mxu0 %v401_v20 }
  0x1b   :  { %367 = vmatpush3.bf16.msra.mxu1 %v403_v21  ;;  %213 = vmatpush1.bf16.msra.mxu0 %v404_v22 }
  0x1c   :  { %368 = vmatprep.subr.bf16.mxu1 %v410_v0  ;;  %214 = vmatprep.subr.bf16.mxu0 %v405_v23 }
  0x1f   :  { %369 = vmatpush3.bf16.msra.mxu1 %v407_v24  ;;  %215 = vmatpush1.bf16.msra.mxu0 %v408_v25 }
  0x22   :  { %371 = vmatmul.mubr.bf16.vlgmr.msra.gmra.mrb[0].mxu1 %v409_v26  ;;  %233 = vmatmul.mubr.bf16.vlgmr.msra.gmra.mrb[0].mxu0 %v409_v26 }
  0xf5   :  { %v277_v36 = vpop.f32.mrb[0].mxu1  ;;  %v234_v38 = vpop.f32.mrb[0].mxu0 }
  0xf6   :  { %v278_v37 = vadd.f32 %v277_v36, %v62_v33  ;;  %v372_v39 = vpop.f32.mrb[1].mxu1  ;;  %v235_v40 = vadd.f32 %v234_v38, %v54_v34  ;;  %v236_v41 = vpop.f32.mrb[1].mxu0 }
  0xf7   :  { %v280_v42 = vpop.f32.mrb[2].mxu1  ;;  %v237_v44 = vadd.f32 %v236_v41, %v58_v35  ;;  %v238_v46 = vpop.f32.mrb[2].mxu0 }
  0xf8   :  { %v342_v43 = vpack.c.bf16 %v278_v37, %v278_v37  ;;  %v281_v45 = vadd.f32 %v280_v42, %v62_v33  ;;  %v373_v47 = vpop.f32.mrb[3].mxu1  ;;  %v239_v48 = vadd.f32 %v238_v46, %v54_v34  ;;  %v240_v49 = vpop.f32.mrb[3].mxu0 }
  0xf9   :  { %v341_v50 = vpack.c.bf16 %v237_v44, %v235_v40  ;;  %v241_v52 = vadd.f32 %v240_v49, %v58_v35 }
  0xfa   :  { %305 = vst [vmem:[%s526_s3 + $0x8] sm:$0xf] %v342_v43  ;;  %v344_v51 = vpack.c.bf16 %v281_v45, %v281_v45 }
  0xfb   :  { %304 = vst [vmem:[%s526_s3] sm:$0xff] %v341_v50  ;;  %v343_v53 = vpack.c.bf16 %v241_v52, %v239_v48 }
  0xfc   :  { %307 = vst [vmem:[%s526_s3 + $0x14] sm:$0xf] %v344_v51 }
  0xfd   :  { %306 = vst [vmem:[%s526_s3 + $0xc] sm:$0xff] %v343_v53 }

// kernel: custom_longformer_forward.11
= control target key start
LH: loop header
LB: loop body
LE: loop exit
PB: predicated region body
PF: predicated region fallthrough
CT: control target
= control target key end

     0   :  { %v581_v1 = vmov 0   ;;  %v49_v34 = vlaneseq  ;;  %s741_s1 = inlined_call_operand.vmem [shape: bf16[128,256], index: 1, kind: input, shape index: {}]   ;;  %s742_s0 = inlined_call_operand.vmem [shape: bf16[16,128], index: 0, kind: input, shape index: {}]   ;;  %s743_s3 = inlined_call_operand.vmem [shape: bf16[256,128], index: 3, kind: input, shape index: {}]   ;;  %s744_s2 = inlined_call_operand.vmem [shape: f32[1,256], index: 2, kind: input, shape index: {}]   ;;  %s745_s4 = inlined_call_operand.vmem [shape: f32[1,128], index: 4, kind: input, shape index: {}]   ;;  %s746_s5 = inlined_call_operand.vmem [shape: f32[1,128], index: 5, kind: input, shape index: {}]   ;;  %s747_s6 = inlined_call_operand.vmem [shape: f32[1,128], index: 6, kind: input, shape index: {}]   ;;  %s748_s7 = inlined_call_operand.vmem [shape: bf16[16,128], index: 7, kind: output, shape index: {}]  }
   0x1   :  { %v527_v0 = vld [vmem:[%s741_s1 + $0x4] ss:$8 sps:$4 sm:$0xff]   ;;  %177 = vmatprep.mubr.bf16.mxu0 %v581_v1  ;;  %v529_v2 = vld [vmem:[%s741_s1] ss:$8 sps:$4 sm:$0xff]   ;;  %v530_v3 = vld [vmem:[%s741_s1 + $0x14] ss:$8 sps:$4 sm:$0xff]  }
   0x2   :  { %145 = vmatprep.subr.bf16.mxu0 %v527_v0  ;;  %v532_v4 = vld [vmem:[%s741_s1 + $0x10] ss:$8 sps:$4 sm:$0xff]   ;;  %v533_v5 = vld [vmem:[%s741_s1 + $0x24] ss:$8 sps:$4 sm:$0xff]   ;;  %v535_v6 = vld [vmem:[%s741_s1 + $0x20] ss:$8 sps:$4 sm:$0xff]  }
   0x3   :  { %146 = vmatpush1.bf16.msra.mxu0 %v529_v2  ;;  %v536_v7 = vld [vmem:[%s741_s1 + $0x34] ss:$8 sps:$4 sm:$0xff]   ;;  %v538_v8 = vld [vmem:[%s741_s1 + $0x30] ss:$8 sps:$4 sm:$0xff]   ;;  %v539_v9 = vld [vmem:[%s741_s1 + $0x44] ss:$8 sps:$4 sm:$0xff]  }
   0x4   :  { %147 = vmatprep.subr.bf16.mxu0 %v530_v3  ;;  %v541_v10 = vld [vmem:[%s741_s1 + $0x40] ss:$8 sps:$4 sm:$0xff]   ;;  %v542_v11 = vld [vmem:[%s741_s1 + $0x54] ss:$8 sps:$4 sm:$0xff]   ;;  %v544_v12 = vld [vmem:[%s741_s1 + $0x50] ss:$8 sps:$4 sm:$0xff]  }
   0x5   :  { %v545_v13 = vld [vmem:[%s741_s1 + $0x64] ss:$8 sps:$4 sm:$0xff]   ;;  %v547_v14 = vld [vmem:[%s741_s1 + $0x60] ss:$8 sps:$4 sm:$0xff]   ;;  %v548_v15 = vld [vmem:[%s741_s1 + $0x74] ss:$8 sps:$4 sm:$0xff]  }
   0x6   :  { %v550_v16 = vld [vmem:[%s741_s1 + $0x70] ss:$8 sps:$4 sm:$0xff]   ;;  %v673_v17 = vld [vmem:[%s742_s0] sm:$0xff]   ;;  %v554_v20 = vld [vmem:[%s743_s3 + $0x48] sm:$0xff]   ;;  %v50_v35 = vshrl.u32 %v49_v34, 7 }
   0x7   :  { %148 = vmatpush1.bf16.msra.mxu0 %v532_v4  ;;  %v552_v18 = vld [vmem:[%s743_s3 + $0x40] sm:$0xff]   ;;  %v555_v21 = vld [vmem:[%s743_s3 + $0x8] sm:$0xff]   ;;  %v556_v22 = vld [vmem:[%s743_s3 + $0x50] sm:$0xff]  }
   0x8   :  { %149 = vmatprep.subr.bf16.mxu0 %v533_v5  ;;  %v553_v19 = vld [vmem:[%s743_s3] sm:$0xff]   ;;  %504 = vmatprep.subr.bf16.mxu1 %v552_v18  ;;  %v557_v23 = vld [vmem:[%s743_s3 + $0x10] sm:$0xff]   ;;  %v558_v24 = vld [vmem:[%s743_s3 + $0x58] sm:$0xff]   ;;  %v51_v36 = vsub.s32 0, %v50_v35  ;;  %v55_v38 = vsub.s32 1, %v50_v35  ;;  %v30_v35 = vunpack.c.h.bf16 %v673_v17 }
   0x9   :  { %505 = vmatpush3.bf16.msra.mxu1 %v553_v19  ;;  %v559_v25 = vld [vmem:[%s743_s3 + $0x18] sm:$0xff]   ;;  %v560_v26 = vld [vmem:[%s743_s3 + $0x60] sm:$0xff]   ;;  %v562_v28 = vld [vmem:[%s743_s3 + $0x68] sm:$0xff]  }
   0xa   :  { %506 = vmatprep.subr.bf16.mxu1 %v554_v20  ;;  %v561_v27 = vld [vmem:[%s743_s3 + $0x20] sm:$0xff]   ;;  %v563_v29 = vld [vmem:[%s743_s3 + $0x28] sm:$0xff]   ;;  %v564_v30 = vld [vmem:[%s743_s3 + $0x70] sm:$0xff]  }
   0xb   :  { %150 = vmatpush1.bf16.msra.mxu0 %v535_v6  ;;  %v565_v31 = vld [vmem:[%s743_s3 + $0x30] sm:$0xff]   ;;  %v566_v32 = vld [vmem:[%s743_s3 + $0x78] sm:$0xff]   ;;  %v47_v37 = vld [vmem:[%s744_s2] sm:$0x3] }
   0xc   :  { %151 = vmatprep.subr.bf16.mxu0 %v536_v7  ;;  %v567_v33 = vld [vmem:[%s743_s3 + $0x38] sm:$0xff]   ;;  %v52_v39 = vrot.slane %v47_v37, %v51_v36  ;;  %v56_v40 = vrot.slane %v47_v37, %v55_v38 }
   0xd   :  { %507 = vmatpush3.bf16.msra.mxu1 %v555_v21 }
   0xe   :  { %508 = vmatprep.subr.bf16.mxu1 %v556_v22 }
   0xf   :  { %152 = vmatpush1.bf16.msra.mxu0 %v538_v8 }
  0x10   :  { %153 = vmatprep.subr.bf16.mxu0 %v539_v9 }
  0x11   :  { %509 = vmatpush3.bf16.msra.mxu1 %v557_v23 }
  0x12   :  { %510 = vmatprep.subr.bf16.mxu1 %v558_v24 }
  0x13   :  { %154 = vmatpush1.bf16.msra.mxu0 %v541_v10 }
  0x14   :  { %155 = vmatprep.subr.bf16.mxu0 %v542_v11 }
  0x15   :  { %511 = vmatpush3.bf16.msra.mxu1 %v559_v25  ;;  %v476_v25 = vld [vmem:[%s745_s4] ss:$0 sm:$0xff] }
  0x16   :  { %512 = vmatprep.subr.bf16.mxu1 %v560_v26 }
  0x17   :  { %156 = vmatpush1.bf16.msra.mxu0 %v544_v12 }
  0x18   :  { %157 = vmatprep.subr.bf16.mxu0 %v545_v13 }
  0x19   :  { %513 = vmatpush3.bf16.msra.mxu1 %v561_v27 }
  0x1a   :  { %514 = vmatprep.subr.bf16.mxu1 %v562_v28 }
  0x1b   :  { %158 = vmatpush1.bf16.msra.mxu0 %v547_v14 }
  0x1c   :  { %159 = vmatprep.subr.bf16.mxu0 %v548_v15 }
  0x1d   :  { %515 = vmatpush3.bf16.msra.mxu1 %v563_v29  ;;  %v29_v29 = vunpack.c.l.bf16 %v673_v17 }
  0x1e   :  { %516 = vmatprep.subr.bf16.mxu1 %v564_v30 }
  0x1f   :  { %160 = vmatpush1.bf16.msra.mxu0 %v550_v16 }
  0x21   :  { %517 = vmatpush3.bf16.msra.mxu1 %v565_v31 }
  0x22   :  { %178 = vmatmul.mubr.bf16.vlgmr.msra.gmra.mrb[0].mxu0 %v673_v17  ;;  %518 = vmatprep.subr.bf16.mxu1 %v566_v32 }
  0x25   :  { %519 = vmatpush3.bf16.msra.mxu1 %v567_v33 }
  0xf5   :  { %v179_v41 = vpop.f32.mrb[0].mxu0 }
  0xf6   :  { %v180_v42 = vadd.f32 %v179_v41, %v52_v39  ;;  %v181_v43 = vpop.f32.mrb[1].mxu0 }
  0xf7   :  { %v182_v44 = vadd.f32 %v181_v43, %v56_v40  ;;  %v183_v45 = vpop.f32.mrb[2].mxu0 }
  0xf8   :  { %v188_v46 = vmul.f32 %v180_v42, %v180_v42  ;;  %v184_v47 = vadd.f32 %v183_v45, %v52_v39  ;;  %v185_v48 = vpop.f32.mrb[3].mxu0 }
  0xf9   :  { %v189_v49 = vmul.f32 %v182_v44, %v182_v44  ;;  %v186_v50 = vadd.f32 %v185_v48, %v56_v40 }
  0xfa   :  { %v192_v51 = vmul.f32 %v188_v46, %v180_v42  ;;  %v190_v52 = vmul.f32 %v184_v47, %v184_v47 }
  0xfb   :  { %v193_v53 = vmul.f32 %v189_v49, %v182_v44  ;;  %v191_v54 = vmul.f32 %v186_v50, %v186_v50 }
  0xfc   :  { %v196_v55 = vmul.f32 0.044715, %v192_v51  ;;  %v194_v56 = vmul.f32 %v190_v52, %v184_v47  ;;  %v493_v52 = vld [vmem:[%s746_s5] ss:$0 sm:$0xff] }
  0xfd   :  { %v197_v57 = vmul.f32 0.044715, %v193_v53  ;;  %v195_v58 = vmul.f32 %v191_v54, %v186_v50 }
  0xfe   :  { %v200_v59 = vadd.f32 %v196_v55, %v180_v42  ;;  %v198_v60 = vmul.f32 0.044715, %v194_v56  ;;  %v494_v56 = vld [vmem:[%s747_s6] ss:$0 sm:$0xff] }
  0xff   :  { %v199_v61 = vmul.f32 0.044715, %v195_v58  ;;  %v201_v62 = vadd.f32 %v197_v57, %v182_v44 }
 0x100   :  { %v204_v63 = vmul.f32 0.7978846, %v200_v59  ;;  %v202_v0 = vadd.f32 %v198_v60, %v184_v47 }
 0x101   :  { %v203_v1 = vadd.f32 %v199_v61, %v186_v50  ;;  %v205_v2 = vmul.f32 0.7978846, %v201_v62 }
 0x102   :  { %569 = vtanh.f32 %v204_v63  ;;  %v206_v3 = vmul.f32 0.7978846, %v202_v0 }
 0x103   :  { %v207_v4 = vmul.f32 0.7978846, %v203_v1  ;;  %571 = vtanh.f32 %v205_v2 }
 0x104   :  { %573 = vtanh.f32 %v206_v3 }
 0x105   :  { %575 = vtanh.f32 %v207_v4 }
 0x10c   :  { %v570_v5 = vpop.eup %569 }
 0x10d   :  { %v572_v6 = vpop.eup %571  ;;  %v212_v7 = vadd.f32 1.0, %v570_v5 }
 0x10e   :  { %v574_v8 = vpop.eup %573  ;;  %v213_v9 = vadd.f32 1.0, %v572_v6 }
 0x10f   :  { %v576_v10 = vpop.eup %575  ;;  %v214_v11 = vadd.f32 1.0, %v574_v8  ;;  %v216_v12 = vmul.f32 0.5, %v212_v7 }
 0x110   :  { %v215_v13 = vadd.f32 1.0, %v576_v10  ;;  %v217_v14 = vmul.f32 0.5, %v213_v9 }
 0x111   :  { %v218_v15 = vmul.f32 0.5, %v214_v11  ;;  %v220_v18 = vmul.f32 %v216_v12, %v180_v42 }
 0x112   :  { %v219_v16 = vmul.f32 0.5, %v215_v13  ;;  %v221_v20 = vmul.f32 %v217_v14, %v182_v44 }
 0x113   :  { %v222_v19 = vmul.f32 %v218_v15, %v184_v47 }
 0x114   :  { %v223_v21 = vmul.f32 %v219_v16, %v186_v50 }
 0x115   :  { %v224_v22 = vpack.c.bf16 %v222_v19, %v220_v18 }
 0x116   :  { %v225_v23 = vpack.c.bf16 %v223_v21, %v221_v20 }
 0x118   :  { %393 = vmatprep.mubr.bf16.mxu1 %v225_v23 }
 0x119   :  { %394 = vmatmul.mubr.bf16.vlgmr.msra.gmra.mrb[0].mxu1 %v224_v22 }
 0x1ec   :  { %v520_v24 = vpop.f32.mrb[0].mxu1 }
 0x1ed   :  { %v521_v26 = vpop.f32.mrb[1].mxu1 }
 0x1ee   :  { %v522_v27 = vadd.f32 %v521_v26, %v520_v24  ;;  %v523_v28 = vpop.f32.mrb[2].mxu1 }
 0x1ef   :  { %v524_v30 = vpop.f32.mrb[3].mxu1 }
 0x1f0   :  { %v396_v31 = vadd.f32 %v522_v27, %v476_v25  ;;  %v525_v32 = vadd.f32 %v524_v30, %v523_v28 }
 0x1f2   :  { %v399_v33 = vadd.f32 %v525_v32, %v476_v25  ;;  %v402_v34 = vadd.f32 %v396_v31, %v29_v29 }
 0x1f4   :  { %404 = vadd.xlane.f32.xlu0 %v402_v34  ;;  %v403_v36 = vadd.f32 %v399_v33, %v30_v35 }
 0x1f8   :  { %406 = vadd.xlane.f32.xlu0 %v403_v36 }
 0x281   :  { %v405_v37 = vpop.xlane.xlu0 %404 }
 0x282   :  { %v409_v38 = vmul.f32 0.0078125, %v405_v37 }
 0x284   :  { %v411_v39 = vsub.f32 %v402_v34, %v409_v38 }
 0x285   :  { %v407_v40 = vpop.xlane.xlu0 %406 }
 0x286   :  { %v410_v41 = vmul.f32 0.0078125, %v407_v40  ;;  %v413_v42 = vmul.f32 %v411_v39, %v411_v39 }
 0x288   :  { %v412_v43 = vsub.f32 %v403_v36, %v410_v41  ;;  %415 = vadd.xlane.f32.xlu1 %v413_v42 }
 0x28a   :  { %v414_v44 = vmul.f32 %v412_v43, %v412_v43 }
 0x28c   :  { %417 = vadd.xlane.f32.xlu1 %v414_v44 }
 0x315   :  { %v416_v45 = vpop.xlane.xlu1 %415 }
 0x316   :  { %v419_v46 = vmul.f32 0.0078125, %v416_v45 }
 0x318   :  { %v421_v47 = vadd.f32 1e-05, %v419_v46 }
 0x319   :  { %v418_v48 = vpop.xlane.xlu1 %417 }
 0x31a   :  { %577 = vrsqrt.f32 %v421_v47  ;;  %v420_v49 = vmul.f32 0.0078125, %v418_v48 }
 0x31c   :  { %v422_v17 = vadd.f32 1e-05, %v420_v49 }
 0x31e   :  { %579 = vrsqrt.f32 %v422_v17 }
 0x324   :  { %v578_v50 = vpop.eup %577 }
 0x325   :  { %v425_v51 = vmul.f32 %v578_v50, %v411_v39 }
 0x327   :  { %v434_v54 = vmul.f32 %v493_v52, %v425_v51 }
 0x328   :  { %v580_v53 = vpop.eup %579 }
 0x329   :  { %v426_v55 = vmul.f32 %v580_v53, %v412_v43  ;;  %v443_v58 = vadd.f32 %v494_v56, %v434_v54 }
 0x32b   :  { %v435_v57 = vmul.f32 %v493_v52, %v426_v55 }
 0x32d   :  { %v444_v59 = vadd.f32 %v494_v56, %v435_v57 }
 0x32f   :  { %v502_v60 = vpack.c.bf16 %v444_v59, %v443_v58 }
 0x331   :  { %503 = vst [vmem:[%s748_s7] sm:$0xff] %v502_v60  }

// kernel: custom_longformer_forward.9
= control target key start
LH: loop header
LB: loop body
LE: loop exit
PB: predicated region body
PF: predicated region fallthrough
CT: control target
= control target key end

     0   :  { %s1612_s0 = inlined_call_operand.vmem [shape: s32[2,1], index: 0, kind: input, shape index: {}]   ;;  %s1613_s1 = inlined_call_operand.vmem [shape: bf16[2,8,384], index: 1, kind: input, shape index: {}, may-alias: {1,2,3}]   ;;  %s1614_s2 = inlined_call_operand.vmem [shape: bf16[2,8,384], index: 2, kind: input, shape index: {}, may-alias: {1,2,3}]   ;;  %s1615_s3 = inlined_call_operand.vmem [shape: bf16[2,8,384], index: 3, kind: input, shape index: {}, may-alias: {1,2,3}]   ;;  %s1616_s4 = inlined_call_operand.vmem [shape: f32[2,1,8], index: 4, kind: input, shape index: {}]   ;;  %s1617_s5 = inlined_call_operand.vmem [shape: bf16[2,8,128], index: 5, kind: output, shape index: {}]  }
   0x1   :  { %s10_s20 = sshll.u32 %s1612_s0, 4  ;;  %s11_s20 = int_to_ptr.vmem [resolvable:$true] %s10_s20 }
   0x2   :  { %s1324_s21 = scalar_lea.vmem %s11_s20, 32  ;;  %p1329_p1 = scmp.lt.s32.totalorder %s11_s20, %s11_s20 }
   0x3   :  { %p1325_p0 = scmp.ne.s32.totalorder %s11_s20, %s1324_s21  ;;  %p1330_p2 = scmp.lt.s32.totalorder %s1324_s21, %s1324_s21 }
   0x5   :  { %p1331_p3 = por %p1330_p2, %p1329_p1 }
   0x7   :  { %p1332_p4 = pnand %p1331_p3, %p1325_p0 }
   0x9   :  { %1335 = shalt.err (!%p1332_p4)  }
   0xa   :  { %s1362_s22 = smov [#allocation6]  }
   0xb   :  { %13 = dma.vmem_to_smem %s11_s20, 32, %s1362_s22, [#allocation5] }
   0xc   :  { %1348 = dma.done.wait [#allocation5], 32 }
   0xd   :  { %1349 = vsyncadd [#allocation5], 4294967264 }
   0xe   :  { %15 = sfence }
   0xf   :  { %s1414_s23 = smov 0   ;;  %s1416_s24 = smov 0  }
  0x10   :  { %s1418_s25 = smov 0  }
  0x11 LB: > { %s40_s0 = sadd.s32 1, %s1356_s24  ;;  %p1140_p5 = scmp.ge.s32.totalorder %s1360_s25, 1  ;;  %s1360_s25 = sphi %s1418_s25, %s21_s25   ;;  %s1356_s24 = sphi %s1416_s24, %s1619_s24   ;;  %s1352_s23 = sphi %s1414_s23, %s1618_s23  }
  0x12   : > { %p42_p6 = scmp.ge.s32.totalorder %s40_s0, 2  ;;  %p243_p7 = scmp.lt.s32.totalorder %s1360_s25, 3 }
  0x14   : > { %s1621_s0 = smov (%p42_p6, %s40_s0), 0  ;;  %p244_p8 = pnand %p1140_p5, %p243_p7 }
  0x15   : > { %p301_p9 = scmp.lt.s32.totalorder (!%p244_p8), %s1352_s23, 1  ;;  %vm348_vm0 = vcmask (!%p244_p8), 31744   ;;  %vm351_vm1 = vcmask (!%p244_p8), 261120   ;;  %v1363_v0 = vmov (!%p244_p8), -1e+30   ;;  %v1364_v1 = vmov (!%p244_p8), 0.0  }
  0x16   : > { %247 = sbr.rel (%p244_p8) target bundleno = 1563 (0x61b), region = 36  ;;  %349 = vst.msk [vmem:[#allocation2] sm:$0xff] (!%p244_p8), %vm348_vm0, %v1363_v0  ;;  %350 = vst.msk [vmem:[#allocation3] sm:$0xff] (!%p244_p8), %vm348_vm0, %v1364_v1  ;;  %s1145_s26 = sshll.u32 (!%p244_p8), %s1352_s23, 7 }
  0x17   : > { %352 = vst.msk [vmem:[#allocation4] sm:$0xff] (!%p244_p8), %vm351_vm1, %v1364_v1  ;;  %353 = vst.msk [vmem:[#allocation4 + $0x8] sm:$0xff] (!%p244_p8), %vm351_vm1, %v1364_v1  ;;  %s363_s27 = sld [smem:[#allocation6 + %s1145_s26]] (!%p244_p8) }
  0x18   : > { %354 = vst.msk [vmem:[#allocation4 + $0x10] sm:$0xff] (!%p244_p8), %vm351_vm1, %v1364_v1  ;;  %355 = vst.msk [vmem:[#allocation4 + $0x18] sm:$0xff] (!%p244_p8), %vm351_vm1, %v1364_v1 }
  0x1d   : > { %s1623_s23 = smov (!%p301_p9, %s1352_s23), 1  ;;  %p1146_p10 = scmp.le.s32.totalorder %s363_s27, 0 }
  0x1e   : > { %s1239_s28 = smul.u32 12, %s1623_s23  ;;  %s335_s6 = scalar_lea.vmem %s1616_s4, %s1623_s23  ;;  %v1365_v3 = vmov (!%p1146_p10), 0.0   ;;  %vm1366_vm2 = vmmov (!%p1146_p10), 0   ;;  %vm427_vm3 = vcmask (!%p1146_p10), 64512   ;;  %v1367_v13 = vmov (!%p1146_p10), 0   ;;  %v1491_v20 = vld [vmem:[#allocation2] sm:$0xff] (!%p1146_p10) }
  0x1f   : > { %s1144_s7 = sshll.u32 %s1623_s23, 2  ;;  %367 = sbr.rel (%p1146_p10) target bundleno = 1296 (0x510), region = 44  ;;  %1191 = vmatprep.subr.bf16.mxu0 (!%p1146_p10), %v1365_v3  ;;  %1193 = vmatprep.mubr.msk.bf16.mxu0 (!%p1146_p10), %vm1366_vm2, %v1365_v3  ;;  %v1474_v6 = vld [vmem:[%s335_s6] ss:$0 sm:$0xff] (!%p1146_p10)  ;;  %vm452_vm4 = vcmask (!%p1146_p10), 1043456   ;;  %v1371_v61 = vmov (!%p1146_p10), 1  }
  0x20   : > { %s1444_s10 = scalar_lea.vmem %s1613_s1, %s1239_s28  ;;  %s1449_s13 = scalar_lea.vmem %s1614_s2, %s1239_s28  ;;  %1197 = vmatprep.subr.bf16.mxu1 (!%p1146_p10), %v1365_v3  ;;  %1199 = vmatprep.mubr.msk.bf16.mxu1 (!%p1146_p10), %vm1366_vm2, %v1365_v3  ;;  %v1372_v62 = vmov (!%p1146_p10), 2   ;;  %vm928_vm5 = vcmask (!%p1146_p10), 7168   ;;  %vm930_vm6 = vcmask (!%p1146_p10), 15360   ;;  %vm932_vm7 = vcmask (!%p1146_p10), 23552  }
  0x21   : > { %s1454_s16 = scalar_lea.vmem %s1615_s3, %s1239_s28  ;;  %s1459_s19 = scalar_lea.vmem %s1617_s5, %s1144_s7  ;;  %v1147_v2 = vld [vmem:[%s1449_s13 + $0x4] sm:$0xf] (!%p1146_p10)  ;;  %v371_v5 = vld [vmem:[%s1444_s10] sm:$0xf] (!%p1146_p10)  ;;  %1283 = vset.pattern.permute.xlu0 (!%p1146_p10), %v1367_v13  ;;  %1284 = vset.pattern.permute.xlu1 (!%p1146_p10), %v1371_v61 }
  0x22   : > { %v385_v4 = vsel (!%p1146_p10), %vm351_vm1, %v1147_v2, 0  ;;  %v1292_v14 = vld [vmem:[%s1449_s13 + $0x4] ss:$0 sps:$4 sm:$0xff] (!%p1146_p10)   ;;  %s1368_s20 = smov (!%p1146_p10), 96   ;;  %v1293_v15 = vld [vmem:[%s1444_s10] ss:$0 sps:$4 sm:$0xff] (!%p1146_p10)  }
  0x23   : > { %1192 = vmatpush3.bf16.xpose.msra.mxu0 (!%p1146_p10), %v385_v4  ;;  %516 = vrot.lane.b32.xlu1 (!%p1146_p10), %v1292_v14, %s1368_s20  ;;  %v1294_v16 = vld [vmem:[%s1449_s13 + $0x4] ss:$0 sps:$4 sm:$0xff] (!%p1146_p10)   ;;  %s1369_s21 = smov (!%p1146_p10), 64   ;;  %v1295_v17 = vld [vmem:[%s1444_s10] ss:$0 sps:$4 sm:$0xff] (!%p1146_p10)   ;;  %s1370_s22 = smov (!%p1146_p10), 32  }
  0x24   : > { %1209 = vmatprep.subr.bf16.mxu0 (!%p1146_p10), %v1365_v3  ;;  %v1296_v18 = vld [vmem:[%s1449_s13 + $0x4] ss:$0 sps:$4 sm:$0xff] (!%p1146_p10)   ;;  %v1297_v19 = vld [vmem:[%s1444_s10] ss:$0 sps:$4 sm:$0xff] (!%p1146_p10)   ;;  %v1148_v23 = vld [vmem:[%s1454_s16 + $0x8] sm:$0xf] (!%p1146_p10) }
  0x25   : > { %v454_v24 = vsel (!%p1146_p10), %vm452_vm4, %v1148_v23, 0  ;;  %v1373_v4 = vmov (!%p1146_p10), 3   ;;  %v1298_v14 = vld [vmem:[%s1454_s16 + $0x8] ss:$0 sps:$4 sm:$0xff] (!%p1146_p10)  }
  0x26   : > { %1198 = vmatpush3.bf16.msra.mxu1 %v454_v24 }
  0x27   : > { %511 = vrot.lane.b32.xlu1 %v1293_v15, %s1368_s20  ;;  %1203 = vmatprep.subr.bf16.mxu1 %v1365_v3  ;;  %v1300_v15 = vld [vmem:[%s1454_s16 + $0x8] ss:$0 sps:$4 sm:$0xff]  }
  0x2a   : > { %1194 = vmatmul.mubr.msk.bf16.vlgmr.msra.gmra.mrb[0].mxu0 %vm351_vm1, %v371_v5 }
  0x2b   : > { %1211 = vmatprep.mubr.msk.bf16.mxu0 %vm1366_vm2, %v1365_v3  ;;  %657 = vrot.lane.b32.xlu1 %v1294_v16, %s1369_s21 }
  0x2f   : > { %652 = vrot.lane.b32.xlu1 %v1295_v17, %s1369_s21 }
  0x33   : > { %798 = vrot.lane.b32.xlu1 %v1296_v18, %s1370_s22 }
  0x37   : > { %793 = vrot.lane.b32.xlu1 %v1297_v19, %s1370_s22 }
  0x95   : > { %v517_v28 = vpop.permute.xlu1 %516 }
  0x96   : > { %v522_v31 = vsel %vm351_vm1, %v517_v28, 0 }
  0x99   : > { %v512_v29 = vpop.permute.xlu1 %511 }
  0x9d   : > { %v658_v33 = vpop.permute.xlu1 %657 }
  0x9e   : > { %v663_v35 = vsel %vm351_vm1, %v658_v33, 0 }
  0xa1   : > { %v653_v34 = vpop.permute.xlu1 %652 }
  0xa5   : > { %v799_v36 = vpop.permute.xlu1 %798 }
  0xa6   : > { %v804_v37 = vsel %vm351_vm1, %v799_v36, 0 }
  0xa9   : > { %v794_v38 = vpop.permute.xlu1 %793 }
  0xfd   : > { %v421_v7 = vpop.f32.mrb[0].mxu0 }
  0xfe   : > { %v422_v8 = vadd.f32 %v1474_v6, %v421_v7  ;;  %v1195_v9 = vpop.f32.mrb[1].mxu0 }
  0xff   : > { %v424_v10 = vpop.f32.mrb[2].mxu0 }
 0x100   : > { %v1196_v11 = vpop.f32.mrb[3].mxu0  ;;  %v428_v12 = vsel %vm427_vm3, %v422_v8, -inf }
 0x101   : > { %429 = vmax.xlane.f32.xlu0 %v428_v12 }
 0x18e   : > { %v430_v21 = vpop.xlane.xlu0 %429 }
 0x18f   : > { %v1494_v22 = vmax.f32 %v1491_v20, %v430_v21 }
 0x191   : > { %437 = vperm.xlu0 %1283, %v1494_v22   ;;  %v432_v63 = vsub.f32 %v1491_v20, %v1494_v22 }
 0x193   : > { %v433_v1 = vmul.f32 1.442695, %v432_v63 }
 0x195   : > { %1285 = vset.pattern.permute.xlu0 %v1372_v62 }
 0x210   : > { %v438_v25 = vpop.permute.xlu0 %437 }
 0x211   : > { %v440_v26 = vsub.f32 %v422_v8, %v438_v25 }
 0x213   : > { %v441_v27 = vmul.f32 1.442695, %v440_v26 }
 0x215   : > { %1301 = vpow2.f32 %v441_v27  ;;  %v496_v27 = vld [vmem:[#allocation4] sm:$0xff] }
 0x216   : > { %1303 = vpow2.f32 %v433_v1 }
 0x21f   : > { %v1500_v30 = vpop.eup %1301 }
 0x220   : > { %v448_v32 = vpack.c.bf16 %v1500_v30, %v1500_v30  ;;  %v1541_v7 = vpop.eup %1303  ;;  %v444_v17 = vsel %vm427_vm3, %v1500_v30, 0.0 }
 0x222   : > { %1200 = vmatmul.mubr.msk.bf16.vlgmr.msra.gmra.mrb[0].mxu1 %vm427_vm3, %v448_v32 }
 0x223   : > { %1204 = vmatpush3.bf16.xpose.msra.mxu1 %v522_v31  ;;  %1205 = vmatprep.mubr.msk.bf16.mxu1 %vm1366_vm2, %v1365_v3 }
 0x224   : > { %1215 = vmatprep.subr.bf16.mxu1 %v1365_v3 }
 0x22a   : > { %1206 = vmatmul.mubr.msk.bf16.vlgmr.msra.gmra.mrb[4].mxu1 %vm351_vm1, %v512_v29 }
 0x22b   : > { %1216 = vmatpush3.bf16.xpose.msra.mxu1 %v663_v35  ;;  %1217 = vmatprep.mubr.msk.bf16.mxu1 %vm1366_vm2, %v1365_v3 }
 0x22c   : > { %1227 = vmatprep.subr.bf16.mxu1 %v1365_v3 }
 0x232   : > { %1218 = vmatmul.mubr.msk.bf16.vlgmr.msra.gmra.mrb[8].mxu1 %vm351_vm1, %v653_v34 }
 0x233   : > { %1228 = vmatpush3.bf16.xpose.msra.mxu1 %v804_v37  ;;  %1229 = vmatprep.mubr.msk.bf16.mxu1 %vm1366_vm2, %v1365_v3 }
 0x23a   : > { %1230 = vmatmul.mubr.msk.bf16.vlgmr.msra.gmra.mrb[12].mxu1 %vm351_vm1, %v794_v38 }
 0x2f5   : > { %v1519_v39 = vpop.f32.mrb[0].mxu1 }
 0x2f6   : > { %v1201_v40 = vpop.f32.mrb[1].mxu1 }
 0x2f7   : > { %v493_v41 = vpop.f32.mrb[2].mxu1 }
 0x2f8   : > { %v1202_v42 = vpop.f32.mrb[3].mxu1 }
 0x2fd   : > { %v558_v43 = vpop.f32.mrb[4].mxu1 }
 0x2fe   : > { %v1522_v44 = vadd.f32 %v1474_v6, %v558_v43  ;;  %v1207_v45 = vpop.f32.mrb[5].mxu1 }
 0x2ff   : > { %v561_v46 = vpop.f32.mrb[6].mxu1 }
 0x300   : > { %v1208_v47 = vpop.f32.mrb[7].mxu1  ;;  %v564_v48 = vsel %vm427_vm3, %v1522_v44, -inf }
 0x301   : > { %565 = vmax.xlane.f32.xlu1 %v564_v48 }
 0x305   : > { %v699_v49 = vpop.f32.mrb[8].mxu1 }
 0x306   : > { %v1527_v50 = vadd.f32 %v1474_v6, %v699_v49  ;;  %v1219_v51 = vpop.f32.mrb[9].mxu1 }
 0x307   : > { %v702_v52 = vpop.f32.mrb[10].mxu1 }
 0x308   : > { %v1220_v53 = vpop.f32.mrb[11].mxu1  ;;  %v705_v54 = vsel %vm427_vm3, %v1527_v50, -inf }
 0x309   : > { %706 = vmax.xlane.f32.xlu0 %v705_v54 }
 0x30d   : > { %v840_v55 = vpop.f32.mrb[12].mxu1 }
 0x30e   : > { %v1532_v56 = vadd.f32 %v1474_v6, %v840_v55  ;;  %v1231_v57 = vpop.f32.mrb[13].mxu1 }
 0x30f   : > { %v843_v58 = vpop.f32.mrb[14].mxu1 }
 0x310   : > { %v1232_v59 = vpop.f32.mrb[15].mxu1  ;;  %v846_v60 = vsel %vm427_vm3, %v1532_v56, -inf }
 0x311   : > { %847 = vmax.xlane.f32.xlu1 %v846_v60 }
 0x38e   : > { %v566_v0 = vpop.xlane.xlu1 %565 }
 0x38f   : > { %v567_v2 = vmax.f32 %v1491_v20, %v566_v0 }
 0x391   : > { %573 = vperm.xlu1 %1284, %v567_v2   ;;  %v929_v9 = vsel %vm928_vm5, %v1494_v22, %v567_v2  ;;  %v568_v16 = vsub.f32 %v1491_v20, %v567_v2 }
 0x393   : > { %v569_v18 = vmul.f32 1.442695, %v568_v16 }
 0x395   : > { %1286 = vset.pattern.permute.xlu1 %v1373_v4  ;;  %1305 = vpow2.f32 %v569_v18 }
 0x396   : > { %v707_v5 = vpop.xlane.xlu0 %706 }
 0x397   : > { %v708_v6 = vmax.f32 %v1491_v20, %v707_v5 }
 0x399   : > { %714 = vperm.xlu0 %1285, %v708_v6   ;;  %v931_v11 = vsel %vm930_vm6, %v929_v9, %v708_v6  ;;  %v709_v36 = vsub.f32 %v1491_v20, %v708_v6 }
 0x39d   : > { %1287 = vset.pattern.permute.xlu0 %v1367_v13  ;;  %v1299_v13 = vld [vmem:[%s1454_s16 + $0x8] ss:$0 sps:$4 sm:$0xff]  }
 0x39e   : > { %v848_v8 = vpop.xlane.xlu1 %847  ;;  %499 = vperm.xlu0 %1287, %v1541_v7  }
 0x39f   : > { %v1548_v10 = vmax.f32 %v1491_v20, %v848_v8  ;;  %v1564_v19 = vpop.eup %1305  ;;  %v637_v8 = vld [vmem:[#allocation4 + $0x8] sm:$0xff] }
 0x3a1   : > { %v933_v12 = vsel %vm932_vm7, %v931_v11, %v1548_v10  ;;  %855 = vperm.xlu1 %1286, %v1548_v10   ;;  %v850_v47 = vsub.f32 %v1491_v20, %v1548_v10 }
 0x3a2   : > { %935 = vst.msk [vmem:[#allocation2] sm:$0xff] %vm348_vm0, %v933_v12  ;;  %1289 = vset.pattern.permute.xlu0 %v1372_v62 }
 0x3a3   : > { %v851_v51 = vmul.f32 1.442695, %v850_v47 }
 0x3a5   : > { %588 = vrot.lane.b32.xlu1 %v1298_v14, %s1368_s20 }
 0x3a6   : > { %1288 = vset.pattern.permute.xlu1 %v1371_v61 }
 0x3a9   : > { %729 = vrot.lane.b32.xlu1 %v1299_v13, %s1369_s21  ;;  %v778_v13 = vld [vmem:[#allocation4 + $0x10] sm:$0xff] }
 0x3ad   : > { %870 = vrot.lane.b32.xlu1 %v1300_v15, %s1370_s22 }
 0x3d1   : > { %445 = vadd.xlane.f32.xlu1 %v444_v17 }
 0x3e2   : > { %640 = vperm.xlu1 %1288, %v1564_v19  }
 0x3e6   : > { %1290 = vset.pattern.permute.xlu1 %v1373_v4 }
 0x410   : > { %v574_v21 = vpop.permute.xlu1 %573 }
 0x411   : > { %v576_v22 = vsub.f32 %v1522_v44, %v574_v21 }
 0x413   : > { %v577_v23 = vmul.f32 1.442695, %v576_v22 }
 0x415   : > { %1307 = vpow2.f32 %v577_v23  ;;  %v919_v23 = vld [vmem:[#allocation4 + $0x18] sm:$0xff] }
 0x418   : > { %v715_v24 = vpop.permute.xlu0 %714 }
 0x419   : > { %v717_v25 = vsub.f32 %v1527_v50, %v715_v24 }
 0x41b   : > { %v718_v26 = vmul.f32 1.442695, %v717_v25 }
 0x41d   : > { %1309 = vpow2.f32 %v718_v26  ;;  %v500_v28 = vpop.permute.xlu0 %499 }
 0x41e   : > { %v502_v29 = vmul.f32 %v500_v28, %v496_v27 }
 0x41f   : > { %v1308_v30 = vpop.eup %1307 }
 0x420   : > { %v503_v31 = vadd.f32 %v502_v29, %v1519_v39  ;;  %v856_v32 = vpop.permute.xlu1 %855  ;;  %v580_v33 = vsel %vm427_vm3, %v1308_v30, 0.0  ;;  %v584_v41 = vpack.c.bf16 %v1308_v30, %v1308_v30  ;;  %v710_v39 = vmul.f32 1.442695, %v709_v36 }
 0x421   : > { %v858_v34 = vsub.f32 %v1532_v56, %v856_v32  ;;  %581 = vadd.xlane.f32.xlu0 %v580_v33  ;;  %v370_v56 = vld [vmem:[#allocation3] sm:$0xff] }
 0x422   : > { %504 = vst.msk [vmem:[#allocation4] sm:$0xff] %vm351_vm1, %v503_v31  ;;  %v579_v58 = vmul.f32 %v1564_v19, %v370_v56 }
 0x423   : > { %v859_v35 = vmul.f32 1.442695, %v858_v34 }
 0x424   : > { %v589_v37 = vpop.permute.xlu1 %588 }
 0x425   : > { %1311 = vpow2.f32 %v859_v35  ;;  %v594_v38 = vsel %vm452_vm4, %v589_v37, 0 }
 0x426   : > { %1210 = vmatpush3.bf16.msra.mxu0 %v594_v38  ;;  %1313 = vpow2.f32 %v710_v39 }
 0x427   : > { %v1310_v40 = vpop.eup %1309  ;;  %1221 = vmatprep.subr.bf16.mxu0 %v1365_v3  ;;  %1315 = vpow2.f32 %v851_v51 }
 0x428   : > { %v721_v42 = vsel %vm427_vm3, %v1310_v40, 0.0  ;;  %v730_v43 = vpop.permute.xlu1 %729  ;;  %v725_v48 = vpack.c.bf16 %v1310_v40, %v1310_v40 }
 0x429   : > { %1212 = vmatmul.mubr.msk.bf16.vlgmr.msra.gmra.mrb[4].mxu0 %vm427_vm3, %v584_v41  ;;  %722 = vadd.xlane.f32.xlu1 %v721_v42  ;;  %v735_v44 = vsel %vm452_vm4, %v730_v43, 0 }
 0x42a   : > { %1222 = vmatpush3.bf16.msra.mxu0 %v735_v44  ;;  %1223 = vmatprep.mubr.msk.bf16.mxu0 %vm1366_vm2, %v1365_v3 }
 0x42b   : > { %1233 = vmatprep.subr.bf16.mxu0 %v1365_v3 }
 0x42c   : > { %v871_v45 = vpop.permute.xlu1 %870 }
 0x42d   : > { %v876_v49 = vsel %vm452_vm4, %v871_v45, 0 }
 0x42f   : > { %v1312_v46 = vpop.eup %1311 }
 0x430   : > { %v862_v50 = vsel %vm427_vm3, %v1312_v46, 0.0  ;;  %v1314_v52 = vpop.eup %1313  ;;  %v866_v53 = vpack.c.bf16 %v1312_v46, %v1312_v46 }
 0x431   : > { %1224 = vmatmul.mubr.msk.bf16.vlgmr.msra.gmra.mrb[8].mxu0 %vm427_vm3, %v725_v48  ;;  %863 = vadd.xlane.f32.xlu1 %v862_v50  ;;  %v1316_v20 = vpop.eup %1315  ;;  %v720_v60 = vmul.f32 %v1314_v52, %v370_v56 }
 0x432   : > { %1234 = vmatpush3.bf16.msra.mxu0 %v876_v49  ;;  %1235 = vmatprep.mubr.msk.bf16.mxu0 %vm1366_vm2, %v1365_v3  ;;  %v443_v3 = vmul.f32 %v1541_v7, %v370_v56  ;;  %v861_v0 = vmul.f32 %v1316_v20, %v370_v56 }
 0x437   : > { %781 = vperm.xlu0 %1289, %v1314_v52  }
 0x439   : > { %1236 = vmatmul.mubr.msk.bf16.vlgmr.msra.gmra.mrb[12].mxu0 %vm427_vm3, %v866_v53 }
 0x43b   : > { %1291 = vset.pattern.permute.xlu0 %v1373_v4 }
 0x442   : > { %922 = vperm.xlu1 %1290, %v1316_v20  }
 0x45e   : > { %v446_v54 = vpop.xlane.xlu1 %445 }
 0x45f   : > { %v447_v63 = vadd.f32 %v446_v54, %v443_v3 }
 0x462   : > { %v641_v55 = vpop.permute.xlu1 %640 }
 0x463   : > { %v643_v9 = vmul.f32 %v641_v55, %v637_v8 }
 0x4ae   : > { %v582_v57 = vpop.xlane.xlu0 %581 }
 0x4af   : > { %v583_v61 = vadd.f32 %v582_v57, %v579_v58 }
 0x4b1   : > { %v936_v2 = vsel %vm928_vm5, %v447_v63, %v583_v61 }
 0x4b6   : > { %v723_v59 = vpop.xlane.xlu1 %722  ;;  %v782_v15 = vpop.permute.xlu0 %781 }
 0x4b7   : > { %v724_v62 = vadd.f32 %v723_v59, %v720_v60  ;;  %v784_v16 = vmul.f32 %v782_v15, %v778_v13 }
 0x4b9   : > { %v937_v5 = vsel %vm930_vm6, %v936_v2, %v724_v62 }
 0x4be   : > { %v864_v1 = vpop.xlane.xlu1 %863 }
 0x4bf   : > { %v865_v4 = vadd.f32 %v864_v1, %v861_v0 }
 0x4c1   : > { %v938_v6 = vsel %vm932_vm7, %v937_v5, %v865_v4 }
 0x4c2   : > { %939 = vst.msk [vmem:[#allocation3] sm:$0xff] %vm348_vm0, %v938_v6  ;;  %v923_v24 = vpop.permute.xlu1 %922 }
 0x4c3   : > { %v925_v25 = vmul.f32 %v923_v24, %v919_v23 }
 0x4fc   : > { %v630_v10 = vpop.f32.mrb[4].mxu0 }
 0x4fd   : > { %v644_v11 = vadd.f32 %v643_v9, %v630_v10  ;;  %v1213_v12 = vpop.f32.mrb[5].mxu0 }
 0x4fe   : > { %v633_v7 = vpop.f32.mrb[6].mxu0 }
 0x4ff   : > { %645 = vst.msk [vmem:[#allocation4 + $0x8] sm:$0xff] %vm351_vm1, %v644_v11  ;;  %v1214_v14 = vpop.f32.mrb[7].mxu0 }
 0x504   : > { %v771_v17 = vpop.f32.mrb[8].mxu0 }
 0x505   : > { %v785_v18 = vadd.f32 %v784_v16, %v771_v17  ;;  %v1225_v19 = vpop.f32.mrb[9].mxu0 }
 0x506   : > { %v774_v21 = vpop.f32.mrb[10].mxu0 }
 0x507   : > { %786 = vst.msk [vmem:[#allocation4 + $0x10] sm:$0xff] %vm351_vm1, %v785_v18  ;;  %v1226_v22 = vpop.f32.mrb[11].mxu0 }
 0x50c   : > { %v912_v26 = vpop.f32.mrb[12].mxu0 }
 0x50d   : > { %v926_v27 = vadd.f32 %v925_v25, %v912_v26  ;;  %v1237_v28 = vpop.f32.mrb[13].mxu0 }
 0x50e   : > { %v915_v29 = vpop.f32.mrb[14].mxu0 }
 0x50f   : > { %927 = vst.msk [vmem:[#allocation4 + $0x18] sm:$0xff] %vm351_vm1, %v926_v27  ;;  %v1238_v30 = vpop.f32.mrb[15].mxu0 }
 0x510 PF: > { %v943_v31 = vld [vmem:[#allocation3] sm:$0xff]  ;;  %v1374_v32 = vmov 1   ;;  %v1375_v33 = vmov 3   ;;  %v1376_v35 = vmov 2   ;;  %v1377_v36 = vmov 0   ;;  %v953_v37 = vld [vmem:[#allocation4 + $0x8] sm:$0xff] }
 0x511   : > { %1317 = vset.pattern.permute.xlu0 %v1374_v32  ;;  %1322 = vrcp.f32 %v943_v31  ;;  %1319 = vset.pattern.permute.xlu1 %v1375_v33  ;;  %s1378_s23 = smov 32   ;;  %v960_v42 = vld [vmem:[#allocation4 + $0x10] sm:$0xff]  ;;  %s1379_s26 = smov 96   ;;  %v945_v47 = vld [vmem:[#allocation4] sm:$0xff]  ;;  %vm987_vm8 = vcmask 523264   ;;  %vm989_vm9 = vcmask 785408  }
 0x512   : > { %s1380_s27 = smov 64  }
 0x516   : > { %v967_v40 = vld [vmem:[#allocation4 + $0x18] sm:$0xff] }
 0x51b   : > { %v1323_v34 = vpop.eup %1322 }
 0x51c   : > { %955 = vperm.xlu0 %1317, %v1323_v34   ;;  %969 = vperm.xlu1 %1319, %v1323_v34  }
 0x520   : > { %1318 = vset.pattern.permute.xlu0 %v1376_v35  ;;  %1320 = vset.pattern.permute.xlu1 %v1377_v36 }
 0x521   : > { %962 = vperm.xlu0 %1318, %v1323_v34   ;;  %948 = vperm.xlu1 %1320, %v1323_v34  }
 0x525   : > { %1321 = vset.pattern.permute.xlu0 %v1375_v33 }
 0x59b   : > { %v956_v38 = vpop.permute.xlu0 %955  ;;  %v970_v41 = vpop.permute.xlu1 %969 }
 0x59c   : > { %v958_v39 = vmul.f32 %v956_v38, %v953_v37  ;;  %v972_v43 = vmul.f32 %v970_v41, %v967_v40 }
 0x59e   : > { %974 = vrot.lane.b32.xlu1 %v958_v39, %s1378_s23 }
 0x5a0   : > { %v963_v44 = vpop.permute.xlu0 %962  ;;  %v949_v46 = vpop.permute.xlu1 %948 }
 0x5a1   : > { %v965_v45 = vmul.f32 %v963_v44, %v960_v42  ;;  %v951_v49 = vmul.f32 %v949_v46, %v945_v47 }
 0x5a2   : > { %982 = vrot.lane.b32.xlu1 %v972_v43, %s1379_s26 }
 0x5a3   : > { %978 = vrot.lane.b32.xlu0 %v965_v45, %s1380_s27 }
 0x610   : > { %v975_v48 = vpop.permute.xlu1 %974 }
 0x611   : > { %v986_v51 = vsel %vm351_vm1, %v951_v49, %v975_v48 }
 0x614   : > { %v983_v50 = vpop.permute.xlu1 %982 }
 0x615   : > { %v979_v52 = vpop.permute.xlu0 %978 }
 0x616   : > { %v988_v53 = vsel %vm987_vm8, %v986_v51, %v979_v52 }
 0x617   : > { %v990_v20 = vsel %vm989_vm9, %v988_v53, %v983_v50 }
 0x618   : > { %v991_v54 = vpack.c.bf16 %v990_v20, %v990_v20 }
 0x61a   : > { %992 = vst [vmem:[%s1459_s19] sm:$0xf] %v991_v54 }
 0x61b PF: > { %s21_s25 = sadd.s32 1, %s1360_s25   ;;  %s1618_s23 = smov %s1356_s24 }
 0x61c   : > { %p18_p11 = scmp.ge.s32.totalorder %s21_s25, 4   ;;  %s1619_s24 = smov %s1621_s0 }
 0x61e   :  { %20 = sbr.rel (!%p18_p11) target bundleno = 17 (0x11), region = 93 }

</bundles_post_ra>
